<compile_context>
chip_gen: v7x
topology: tpu7x:2x2x1
jax: 0.10.0
libtpu: 0.0.40
codegen_flags: <defaults>
</compile_context>

<pallas_src>
import math

import jax
import jax.numpy as jnp
from jax.experimental import pallas as pl
from jax.experimental.pallas import tpu as pltpu  # noqa: F401  (kept for TPU-specific tuning hooks)

# ----------------------------- small synthetic config ------------------------------
VOCAB = 100          # word vocab
PINYIN_VOCAB = 30    # pinyin char vocab
PINYIN_EMB = 16      # pinyin char embedding size
GLYPH_DIM = 48       # synthetic glyph embedding dim
HIDDEN = 32
NUM_HEADS = 4
HEAD_DIM = HIDDEN // NUM_HEADS
QKV_W = NUM_HEADS * HEAD_DIM          # 32 lanes per Q / K / V block
FFN = 64
NUM_LAYERS = 2
MAX_POS = 16
TYPE_VOCAB = 2
CLASSES = 10         # len(all_labels)
BATCH = 2
SEQ = 8
BS = BATCH * SEQ
LN_EPS = 1e-12
PIN_LEN = 8          # pinyin chars per token
CONV_K = 2           # Conv1d kernel size
N_POS = PIN_LEN - CONV_K + 1   # conv output positions (7)


def _ln(x, g, b):
    mean = jnp.mean(x, axis=-1, keepdims=True)
    var = jnp.mean(jnp.square(x - mean), axis=-1, keepdims=True)
    return (x - mean) * jax.lax.rsqrt(var + LN_EPS) * g + b


# ---------------------- fused forward kernel (single invocation) --------------------
def _fused_forward_kernel(word_ref, glyph_ref, pe_ref, pos_tt_ref, mask_ref, cls_sel_ref,
                          gmap_w_ref, pconv_w_ref, mapfc_w_ref, emb_vec_ref,
                          attn_w_ref, attn_b_ref, wo_ref, lvec_ref,
                          w1_ref, b1_ref, w2_ref, fc_w_ref, fc_b_ref,
                          out_ref):
    scale = 1.0 / math.sqrt(HEAD_DIM)

    # ---- FusionBertEmbeddings: glyph map + pinyin Conv1d(k=2)+maxpool + map_fc + LN ----
    glyph = jnp.dot(glyph_ref[...], gmap_w_ref[...],
                    preferred_element_type=jnp.float32) + emb_vec_ref[0]

    # pinyin conv: two wide matmuls over all (position, token) rows, then shifted adds.
    pe = pe_ref[...]                                                     # (PIN_LEN*BS, PE)
    a = jnp.dot(pe, pconv_w_ref[0], preferred_element_type=jnp.float32)  # tap 0 contribution
    b = jnp.dot(pe, pconv_w_ref[1], preferred_element_type=jnp.float32)  # tap 1 contribution
    pooled = a[0:BS] + b[BS:2 * BS]
    for p in range(1, N_POS):
        pooled = jnp.maximum(pooled, a[p * BS:(p + 1) * BS] + b[(p + 1) * BS:(p + 2) * BS])
    pooled = pooled + emb_vec_ref[1]          # conv bias commutes with the max-pool

    # concat([word, glyph, pinyin]) @ map_fc  ==  sum of three (H,H) matmuls
    emb = (jnp.dot(word_ref[...], mapfc_w_ref[0], preferred_element_type=jnp.float32)
           + jnp.dot(glyph, mapfc_w_ref[1], preferred_element_type=jnp.float32)
           + jnp.dot(pooled, mapfc_w_ref[2], preferred_element_type=jnp.float32)
           + emb_vec_ref[2])
    emb = emb + pos_tt_ref[...]               # position + token-type embeddings
    x = _ln(emb, emb_vec_ref[3], emb_vec_ref[4])

    mask = mask_ref[...]                      # (BS, BS) block-diagonal additive key mask

    # ---- transformer encoder layers (batch folded into rows; all on-chip) ----
    for l in range(NUM_LAYERS):
        qkv = jnp.dot(x, attn_w_ref[l],
                      preferred_element_type=jnp.float32) + attn_b_ref[l]   # (BS, 3*NH*Dh)
        ctx_heads = []
        for h in range(NUM_HEADS):
            q = qkv[:, h * HEAD_DIM:(h + 1) * HEAD_DIM]
            k = qkv[:, QKV_W + h * HEAD_DIM:QKV_W + (h + 1) * HEAD_DIM]
            v = qkv[:, 2 * QKV_W + h * HEAD_DIM:2 * QKV_W + (h + 1) * HEAD_DIM]
            s = jax.lax.dot_general(q, k, (((1,), (1,)), ((), ())),
                                    preferred_element_type=jnp.float32) * scale + mask
            s = s - jnp.max(s, axis=-1, keepdims=True)
            p = jnp.exp(s)
            p = p / jnp.sum(p, axis=-1, keepdims=True)
            ctx_heads.append(jnp.dot(p, v, preferred_element_type=jnp.float32))  # (BS, Dh)
        ctx = jnp.concatenate(ctx_heads, axis=-1)                               # (BS, NH*Dh)
        attn_out = jnp.dot(ctx, wo_ref[l],
                           preferred_element_type=jnp.float32) + lvec_ref[l, 0]
        x = _ln(attn_out + x, lvec_ref[l, 1], lvec_ref[l, 2])

        ff = jnp.dot(x, w1_ref[l], preferred_element_type=jnp.float32) + b1_ref[l]
        # TODO(synk): HF ChineseBERT uses exact (erf) GELU; tanh-approx kept (Mosaic-safe).
        ff = jax.nn.gelu(ff)
        ff = jnp.dot(ff, w2_ref[l], preferred_element_type=jnp.float32) + lvec_ref[l, 3]
        x = _ln(ff + x, lvec_ref[l, 4], lvec_ref[l, 5])

    # ---- fused CLS extraction + classifier head ----
    cls = jnp.dot(cls_sel_ref[...], x, preferred_element_type=jnp.float32)       # (B, H)
    logits = jnp.dot(cls, fc_w_ref[...], preferred_element_type=jnp.float32) + fc_b_ref[...]
    out_ref[...] = logits.astype(out_ref.dtype)


# --------------------------------- forward pass --------------------------------------
@jax.jit
def bert_model_forward(params, input_ids, attention_mask, token_type_ids, pinyin_ids):
    B, S = input_ids.shape
    H = HIDDEN
    bs = B * S

    # Integer gathers + tiny layout prep stay in XLA; everything dense runs fused.
    word = params["word_emb"][input_ids].reshape(bs, H)                       # (BS, H)
    glyph = params["glyph_emb"][input_ids].reshape(bs, GLYPH_DIM)             # (BS, GD)
    pe = params["pinyin_emb"][pinyin_ids.reshape(B, S, PIN_LEN)]              # (B,S,8,PE)
    pe = pe.transpose(2, 0, 1, 3).reshape(PIN_LEN * bs, PINYIN_EMB)           # (8*BS, PE)
    pos_tt = (params["pos_emb"][:S][None, :, :]
              + params["tt_emb"][token_type_ids]).reshape(bs, H)              # (BS, H)

    # Block-diagonal additive key mask so folded batches never attend across batches.
    batch_id = jnp.repeat(jnp.arange(B), S)
    key_ok = attention_mask.reshape(bs).astype(jnp.float32) > 0.5
    allowed = (batch_id[:, None] == batch_id[None, :]) & key_ok[None, :]
    mask_add = jnp.where(allowed, 0.0, -10000.0).astype(jnp.float32)          # (BS, BS)

    # Selection matrix picking each batch's CLS row (row b*S) inside the kernel.
    cls_sel = jnp.zeros((B, bs), jnp.float32).at[jnp.arange(B), jnp.arange(B) * S].set(1.0)

    logits = pl.pallas_call(
        _fused_forward_kernel,
        out_shape=jax.ShapeDtypeStruct((B, CLASSES), jnp.float32),
    )(word, glyph, pe, pos_tt, mask_add, cls_sel,
      params["glyph_map_w"], params["pinyin_conv_w"], params["mapfc_w"], params["emb_vec"],
      params["attn_w"], params["attn_b"], params["wo"], params["lvec"],
      params["w1"], params["b1"], params["w2"], params["fc_w"], params["fc_b"])
    return logits


# ------------------------------ parameter init ---------------------------------------
def _norm(key, shape, scale=0.02):
    return (scale * jax.random.normal(key, shape)).astype(jnp.float32)


def init_params(key):
    ks = iter(jax.random.split(key, 64))
    H = HIDDEN
    zeros_h = jnp.zeros((1, H), jnp.float32)
    ones_h = jnp.ones((1, H), jnp.float32)
    p = {
        "word_emb": _norm(next(ks), (VOCAB, H)),
        "glyph_emb": _norm(next(ks), (VOCAB, GLYPH_DIM)),
        "pinyin_emb": _norm(next(ks), (PINYIN_VOCAB, PINYIN_EMB)),
        "glyph_map_w": _norm(next(ks), (GLYPH_DIM, H)),
        "pinyin_conv_w": _norm(next(ks), (CONV_K, PINYIN_EMB, H)),  # per-tap conv weights
        "mapfc_w": _norm(next(ks), (3, H, H)),      # map_fc split along the concat axis
        "pos_emb": _norm(next(ks), (MAX_POS, H)),
        "tt_emb": _norm(next(ks), (TYPE_VOCAB, H)),
        # packed (1,H) vectors: [glyph_map_b, pinyin_conv_b, map_fc_b, emb_ln_g, emb_ln_b]
        "emb_vec": jnp.stack([_norm(next(ks), (1, H)), _norm(next(ks), (1, H)),
                              _norm(next(ks), (1, H)), ones_h, zeros_h]),
        "fc_w": _norm(next(ks), (H, CLASSES)),
        "fc_b": _norm(next(ks), (1, CLASSES)),
    }
    attn_w, attn_b, wo, lvec, w1, b1, w2 = ([] for _ in range(7))
    for _ in range(NUM_LAYERS):
        # fused QKV weights: lanes = [Q heads | K heads | V heads], head-major within block
        attn_w.append(_norm(next(ks), (H, 3 * QKV_W)))
        attn_b.append(_norm(next(ks), (1, 3 * QKV_W)))
        wo.append(_norm(next(ks), (QKV_W, H)))        # rows head-major (matches ctx concat)
        # packed per-layer (1,H) vectors: [bo, ln1_g, ln1_b, b2, ln2_g, ln2_b]
        lvec.append(jnp.stack([_norm(next(ks), (1, H)), ones_h, zeros_h,
                               _norm(next(ks), (1, H)), ones_h, zeros_h]))
        w1.append(_norm(next(ks), (H, FFN)))
        b1.append(_norm(next(ks), (1, FFN)))
        w2.append(_norm(next(ks), (FFN, H)))
    p.update(attn_w=jnp.stack(attn_w), attn_b=jnp.stack(attn_b), wo=jnp.stack(wo),
             lvec=jnp.stack(lvec), w1=jnp.stack(w1), b1=jnp.stack(b1), w2=jnp.stack(w2))
    return p


# ------------------------------ plain-JAX reference ----------------------------------
def reference_forward(params, input_ids, attention_mask, token_type_ids, pinyin_ids):
    B, S = input_ids.shape
    H = HIDDEN
    ev = params["emb_vec"][:, 0, :]                                        # (5, H)
    word = params["word_emb"][input_ids]
    glyph = params["glyph_emb"][input_ids] @ params["glyph_map_w"] + ev[0]
    pe = params["pinyin_emb"][pinyin_ids.reshape(B, S, PIN_LEN)]           # (B,S,8,PE)
    w0, w1c = params["pinyin_conv_w"][0], params["pinyin_conv_w"][1]
    conv = (jnp.einsum("bspk,kh->bsph", pe[:, :, :-1, :], w0)
            + jnp.einsum("bspk,kh->bsph", pe[:, :, 1:, :], w1c) + ev[1])
    pooled = jnp.max(conv, axis=2)
    emb = (word @ params["mapfc_w"][0] + glyph @ params["mapfc_w"][1]
           + pooled @ params["mapfc_w"][2] + ev[2])
    emb = emb + params["pos_emb"][:S][None] + params["tt_emb"][token_type_ids]
    x = _ln(emb, ev[3], ev[4])

    mask = ((1.0 - attention_mask.astype(jnp.float32)) * -10000.0)[:, None, None, :]
    scale = 1.0 / math.sqrt(HEAD_DIM)
    for l in range(NUM_LAYERS):
        lv = params["lvec"][l, :, 0, :]
        qkv = x @ params["attn_w"][l] + params["attn_b"][l]                # (B,S,3*NH*Dh)
        q = qkv[..., 0:QKV_W].reshape(B, S, NUM_HEADS, HEAD_DIM)
        k = qkv[..., QKV_W:2 * QKV_W].reshape(B, S, NUM_HEADS, HEAD_DIM)
        v = qkv[..., 2 * QKV_W:3 * QKV_W].reshape(B, S, NUM_HEADS, HEAD_DIM)
        s = jnp.einsum("bsnd,btnd->bnst", q, k) * scale + mask
        p = jax.nn.softmax(s, axis=-1)
        ctx = jnp.einsum("bnst,btnd->bsnd", p, v).reshape(B, S, QKV_W)
        attn_out = ctx @ params["wo"][l] + lv[0]
        x = _ln(attn_out + x, lv[1], lv[2])
        ff = jax.nn.gelu(x @ params["w1"][l] + params["b1"][l][0])
        ff = ff @ params["w2"][l] + lv[3]
        x = _ln(ff + x, lv[4], lv[5])

    cls = x[:, 0, :]
    return cls @ params["fc_w"] + params["fc_b"][0]


# ------------------------------------- main ------------------------------------------
if __name__ == "__main__":
    key = jax.random.PRNGKey(0)
    k_param, k_ids, k_pin = jax.random.split(key, 3)

    params = init_params(k_param)

    input_ids = jax.random.randint(k_ids, (BATCH, SEQ), 0, VOCAB, dtype=jnp.int32)
    pinyin_ids = jax.random.randint(k_pin, (BATCH, SEQ * PIN_LEN), 0, PINYIN_VOCAB,
                                    dtype=jnp.int32)
    token_type_ids = jnp.zeros((BATCH, SEQ), jnp.int32)
    attention_mask = jnp.ones((BATCH, SEQ), jnp.int32).at[1, SEQ - 2:].set(0)  # exercise mask

    logits = bert_model_forward(params, input_ids, attention_mask, token_type_ids, pinyin_ids)
    logits = jax.block_until_ready(logits)
    assert logits.shape == (BATCH, CLASSES) and logits.dtype == jnp.float32

    with jax.default_matmul_precision("float32"):
        ref = reference_forward(params, input_ids, attention_mask, token_type_ids, pinyin_ids)
    assert jnp.allclose(logits, ref, atol=2e-2, rtol=2e-2), (
        f"max abs diff {jnp.max(jnp.abs(logits - ref))}")

    print("KERNEL_OK")
</pallas_src>

<mosaic_0001>
module attributes {stable_mosaic.version = 11 : i64} {
  func.func @_fused_forward_kernel(%arg0: memref<16x32xf32, #tpu.memory_space<vmem>>, %arg1: memref<16x48xf32, #tpu.memory_space<vmem>>, %arg2: memref<128x16xf32, #tpu.memory_space<vmem>>, %arg3: memref<16x32xf32, #tpu.memory_space<vmem>>, %arg4: memref<16x16xf32, #tpu.memory_space<vmem>>, %arg5: memref<2x16xf32, #tpu.memory_space<vmem>>, %arg6: memref<48x32xf32, #tpu.memory_space<vmem>>, %arg7: memref<2x16x32xf32, #tpu.memory_space<vmem>>, %arg8: memref<3x32x32xf32, #tpu.memory_space<vmem>>, %arg9: memref<5x1x32xf32, #tpu.memory_space<vmem>>, %arg10: memref<2x32x96xf32, #tpu.memory_space<vmem>>, %arg11: memref<2x1x96xf32, #tpu.memory_space<vmem>>, %arg12: memref<2x32x32xf32, #tpu.memory_space<vmem>>, %arg13: memref<2x6x1x32xf32, #tpu.memory_space<vmem>>, %arg14: memref<2x32x64xf32, #tpu.memory_space<vmem>>, %arg15: memref<2x1x64xf32, #tpu.memory_space<vmem>>, %arg16: memref<2x64x32xf32, #tpu.memory_space<vmem>>, %arg17: memref<32x10xf32, #tpu.memory_space<vmem>>, %arg18: memref<1x10xf32, #tpu.memory_space<vmem>>, %arg19: memref<2x10xf32, #tpu.memory_space<vmem>>) attributes {dimension_semantics = [], scalar_prefetch = 0 : i64, scratch_operands = 0 : i64, tpu.core_type = #tpu.core_type<tc>} {
    %c0 = arith.constant 0 : index
    %c0_0 = arith.constant 0 : index
    %0 = vector.load %arg1[%c0, %c0_0] : memref<16x48xf32, #tpu.memory_space<vmem>>, vector<16x48xf32>
    %c0_1 = arith.constant 0 : index
    %c0_2 = arith.constant 0 : index
    %1 = vector.load %arg6[%c0_1, %c0_2] : memref<48x32xf32, #tpu.memory_space<vmem>>, vector<48x32xf32>
    %cst = arith.constant dense<0.000000e+00> : vector<16x32xf32>
    %2 = tpu.matmul %0, %1, %cst {dimension_numbers = #tpu.dot_dimension_numbers<[1], [0], [0], [1], [0, 0, 1, 1], [], []>} : vector<16x48xf32>, vector<48x32xf32>, vector<16x32xf32> -> vector<16x32xf32>
    %c0_3 = arith.constant 0 : index
    %c0_4 = arith.constant 0 : index
    %c0_5 = arith.constant 0 : index
    %3 = vector.load %arg9[%c0_3, %c0_4, %c0_5] : memref<5x1x32xf32, #tpu.memory_space<vmem>>, vector<1x1x32xf32>
    %4 = vector.shape_cast %3 : vector<1x1x32xf32> to vector<1x32xf32>
    %5 = vector.broadcast %4 : vector<1x32xf32> to vector<16x32xf32>
    %6 = arith.addf %2, %5 : vector<16x32xf32>
    %c0_6 = arith.constant 0 : index
    %c0_7 = arith.constant 0 : index
    %7 = vector.load %arg2[%c0_6, %c0_7] : memref<128x16xf32, #tpu.memory_space<vmem>>, vector<128x16xf32>
    %c0_8 = arith.constant 0 : index
    %c0_9 = arith.constant 0 : index
    %c0_10 = arith.constant 0 : index
    %8 = vector.load %arg7[%c0_8, %c0_9, %c0_10] : memref<2x16x32xf32, #tpu.memory_space<vmem>>, vector<1x16x32xf32>
    %9 = vector.shape_cast %8 : vector<1x16x32xf32> to vector<16x32xf32>
    %cst_11 = arith.constant dense<0.000000e+00> : vector<128x32xf32>
    %10 = tpu.matmul %7, %9, %cst_11 {dimension_numbers = #tpu.dot_dimension_numbers<[1], [0], [0], [1], [0, 0, 1, 1], [], []>} : vector<128x16xf32>, vector<16x32xf32>, vector<128x32xf32> -> vector<128x32xf32>
    %c1 = arith.constant 1 : index
    %c0_12 = arith.constant 0 : index
    %c0_13 = arith.constant 0 : index
    %11 = vector.load %arg7[%c1, %c0_12, %c0_13] : memref<2x16x32xf32, #tpu.memory_space<vmem>>, vector<1x16x32xf32>
    %12 = vector.shape_cast %11 : vector<1x16x32xf32> to vector<16x32xf32>
    %cst_14 = arith.constant dense<0.000000e+00> : vector<128x32xf32>
    %13 = tpu.matmul %7, %12, %cst_14 {dimension_numbers = #tpu.dot_dimension_numbers<[1], [0], [0], [1], [0, 0, 1, 1], [], []>} : vector<128x16xf32>, vector<16x32xf32>, vector<128x32xf32> -> vector<128x32xf32>
    %14 = vector.extract_strided_slice %10 {offsets = [0, 0], sizes = [16, 32], strides = [1, 1]} : vector<128x32xf32> to vector<16x32xf32>
    %15 = vector.extract_strided_slice %13 {offsets = [16, 0], sizes = [16, 32], strides = [1, 1]} : vector<128x32xf32> to vector<16x32xf32>
    %16 = arith.addf %14, %15 : vector<16x32xf32>
    %17 = vector.extract_strided_slice %10 {offsets = [16, 0], sizes = [16, 32], strides = [1, 1]} : vector<128x32xf32> to vector<16x32xf32>
    %18 = vector.extract_strided_slice %13 {offsets = [32, 0], sizes = [16, 32], strides = [1, 1]} : vector<128x32xf32> to vector<16x32xf32>
    %19 = arith.addf %17, %18 : vector<16x32xf32>
    %20 = arith.maximumf %16, %19 : vector<16x32xf32>
    %21 = vector.extract_strided_slice %10 {offsets = [32, 0], sizes = [16, 32], strides = [1, 1]} : vector<128x32xf32> to vector<16x32xf32>
    %22 = vector.extract_strided_slice %13 {offsets = [48, 0], sizes = [16, 32], strides = [1, 1]} : vector<128x32xf32> to vector<16x32xf32>
    %23 = arith.addf %21, %22 : vector<16x32xf32>
    %24 = arith.maximumf %20, %23 : vector<16x32xf32>
    %25 = vector.extract_strided_slice %10 {offsets = [48, 0], sizes = [16, 32], strides = [1, 1]} : vector<128x32xf32> to vector<16x32xf32>
    %26 = vector.extract_strided_slice %13 {offsets = [64, 0], sizes = [16, 32], strides = [1, 1]} : vector<128x32xf32> to vector<16x32xf32>
    %27 = arith.addf %25, %26 : vector<16x32xf32>
    %28 = arith.maximumf %24, %27 : vector<16x32xf32>
    %29 = vector.extract_strided_slice %10 {offsets = [64, 0], sizes = [16, 32], strides = [1, 1]} : vector<128x32xf32> to vector<16x32xf32>
    %30 = vector.extract_strided_slice %13 {offsets = [80, 0], sizes = [16, 32], strides = [1, 1]} : vector<128x32xf32> to vector<16x32xf32>
    %31 = arith.addf %29, %30 : vector<16x32xf32>
    %32 = arith.maximumf %28, %31 : vector<16x32xf32>
    %33 = vector.extract_strided_slice %10 {offsets = [80, 0], sizes = [16, 32], strides = [1, 1]} : vector<128x32xf32> to vector<16x32xf32>
    %34 = vector.extract_strided_slice %13 {offsets = [96, 0], sizes = [16, 32], strides = [1, 1]} : vector<128x32xf32> to vector<16x32xf32>
    %35 = arith.addf %33, %34 : vector<16x32xf32>
    %36 = arith.maximumf %32, %35 : vector<16x32xf32>
    %37 = vector.extract_strided_slice %10 {offsets = [96, 0], sizes = [16, 32], strides = [1, 1]} : vector<128x32xf32> to vector<16x32xf32>
    %38 = vector.extract_strided_slice %13 {offsets = [112, 0], sizes = [16, 32], strides = [1, 1]} : vector<128x32xf32> to vector<16x32xf32>
    %39 = arith.addf %37, %38 : vector<16x32xf32>
    %40 = arith.maximumf %36, %39 : vector<16x32xf32>
    %c1_15 = arith.constant 1 : index
    %c0_16 = arith.constant 0 : index
    %c0_17 = arith.constant 0 : index
    %41 = vector.load %arg9[%c1_15, %c0_16, %c0_17] : memref<5x1x32xf32, #tpu.memory_space<vmem>>, vector<1x1x32xf32>
    %42 = vector.shape_cast %41 : vector<1x1x32xf32> to vector<1x32xf32>
    %43 = vector.broadcast %42 : vector<1x32xf32> to vector<16x32xf32>
    %44 = arith.addf %40, %43 : vector<16x32xf32>
    %c0_18 = arith.constant 0 : index
    %c0_19 = arith.constant 0 : index
    %45 = vector.load %arg0[%c0_18, %c0_19] : memref<16x32xf32, #tpu.memory_space<vmem>>, vector<16x32xf32>
    %c0_20 = arith.constant 0 : index
    %c0_21 = arith.constant 0 : index
    %c0_22 = arith.constant 0 : index
    %46 = vector.load %arg8[%c0_20, %c0_21, %c0_22] : memref<3x32x32xf32, #tpu.memory_space<vmem>>, vector<1x32x32xf32>
    %47 = vector.shape_cast %46 : vector<1x32x32xf32> to vector<32x32xf32>
    %cst_23 = arith.constant dense<0.000000e+00> : vector<16x32xf32>
    %48 = tpu.matmul %45, %47, %cst_23 {dimension_numbers = #tpu.dot_dimension_numbers<[1], [0], [0], [1], [0, 0, 1, 1], [], []>} : vector<16x32xf32>, vector<32x32xf32>, vector<16x32xf32> -> vector<16x32xf32>
    %c1_24 = arith.constant 1 : index
    %c0_25 = arith.constant 0 : index
    %c0_26 = arith.constant 0 : index
    %49 = vector.load %arg8[%c1_24, %c0_25, %c0_26] : memref<3x32x32xf32, #tpu.memory_space<vmem>>, vector<1x32x32xf32>
    %50 = vector.shape_cast %49 : vector<1x32x32xf32> to vector<32x32xf32>
    %cst_27 = arith.constant dense<0.000000e+00> : vector<16x32xf32>
    %51 = tpu.matmul %6, %50, %cst_27 {dimension_numbers = #tpu.dot_dimension_numbers<[1], [0], [0], [1], [0, 0, 1, 1], [], []>} : vector<16x32xf32>, vector<32x32xf32>, vector<16x32xf32> -> vector<16x32xf32>
    %52 = arith.addf %48, %51 : vector<16x32xf32>
    %c2 = arith.constant 2 : index
    %c0_28 = arith.constant 0 : index
    %c0_29 = arith.constant 0 : index
    %53 = vector.load %arg8[%c2, %c0_28, %c0_29] : memref<3x32x32xf32, #tpu.memory_space<vmem>>, vector<1x32x32xf32>
    %54 = vector.shape_cast %53 : vector<1x32x32xf32> to vector<32x32xf32>
    %cst_30 = arith.constant dense<0.000000e+00> : vector<16x32xf32>
    %55 = tpu.matmul %44, %54, %cst_30 {dimension_numbers = #tpu.dot_dimension_numbers<[1], [0], [0], [1], [0, 0, 1, 1], [], []>} : vector<16x32xf32>, vector<32x32xf32>, vector<16x32xf32> -> vector<16x32xf32>
    %56 = arith.addf %52, %55 : vector<16x32xf32>
    %c2_31 = arith.constant 2 : index
    %c0_32 = arith.constant 0 : index
    %c0_33 = arith.constant 0 : index
    %57 = vector.load %arg9[%c2_31, %c0_32, %c0_33] : memref<5x1x32xf32, #tpu.memory_space<vmem>>, vector<1x1x32xf32>
    %58 = vector.shape_cast %57 : vector<1x1x32xf32> to vector<1x32xf32>
    %59 = vector.broadcast %58 : vector<1x32xf32> to vector<16x32xf32>
    %60 = arith.addf %56, %59 : vector<16x32xf32>
    %c0_34 = arith.constant 0 : index
    %c0_35 = arith.constant 0 : index
    %61 = vector.load %arg3[%c0_34, %c0_35] : memref<16x32xf32, #tpu.memory_space<vmem>>, vector<16x32xf32>
    %62 = arith.addf %60, %61 : vector<16x32xf32>
    %c3 = arith.constant 3 : index
    %c0_36 = arith.constant 0 : index
    %c0_37 = arith.constant 0 : index
    %63 = vector.load %arg9[%c3, %c0_36, %c0_37] : memref<5x1x32xf32, #tpu.memory_space<vmem>>, vector<1x1x32xf32>
    %64 = vector.shape_cast %63 : vector<1x1x32xf32> to vector<1x32xf32>
    %c4 = arith.constant 4 : index
    %c0_38 = arith.constant 0 : index
    %c0_39 = arith.constant 0 : index
    %65 = vector.load %arg9[%c4, %c0_38, %c0_39] : memref<5x1x32xf32, #tpu.memory_space<vmem>>, vector<1x1x32xf32>
    %66 = vector.shape_cast %65 : vector<1x1x32xf32> to vector<1x32xf32>
    %cst_40 = arith.constant dense<0.000000e+00> : vector<16xf32>
    %67 = vector.multi_reduction <add>, %62, %cst_40 [1] : vector<16x32xf32> to vector<16xf32>
    %68 = vector.shape_cast %67 : vector<16xf32> to vector<16x1xf32>
    %cst_41 = arith.constant 3.200000e+01 : f32
    %69 = vector.broadcast %cst_41 : f32 to vector<16x1xf32>
    %70 = arith.divf %68, %69 : vector<16x1xf32>
    %71 = vector.broadcast %70 : vector<16x1xf32> to vector<16x32xf32>
    %72 = arith.subf %62, %71 : vector<16x32xf32>
    %73 = arith.mulf %72, %72 : vector<16x32xf32>
    %cst_42 = arith.constant dense<0.000000e+00> : vector<16xf32>
    %74 = vector.multi_reduction <add>, %73, %cst_42 [1] : vector<16x32xf32> to vector<16xf32>
    %75 = vector.shape_cast %74 : vector<16xf32> to vector<16x1xf32>
    %cst_43 = arith.constant 3.200000e+01 : f32
    %76 = vector.broadcast %cst_43 : f32 to vector<16x1xf32>
    %77 = arith.divf %75, %76 : vector<16x1xf32>
    %78 = vector.broadcast %70 : vector<16x1xf32> to vector<16x32xf32>
    %79 = arith.subf %62, %78 : vector<16x32xf32>
    %cst_44 = arith.constant 9.99999996E-13 : f32
    %80 = vector.broadcast %cst_44 : f32 to vector<16x1xf32>
    %81 = arith.addf %77, %80 : vector<16x1xf32>
    %82 = math.rsqrt %81 : vector<16x1xf32>
    %83 = vector.broadcast %82 : vector<16x1xf32> to vector<16x32xf32>
    %84 = arith.mulf %79, %83 : vector<16x32xf32>
    %85 = vector.broadcast %64 : vector<1x32xf32> to vector<16x32xf32>
    %86 = arith.mulf %84, %85 : vector<16x32xf32>
    %87 = vector.broadcast %66 : vector<1x32xf32> to vector<16x32xf32>
    %88 = arith.addf %86, %87 : vector<16x32xf32>
    %c0_45 = arith.constant 0 : index
    %c0_46 = arith.constant 0 : index
    %89 = vector.load %arg4[%c0_45, %c0_46] : memref<16x16xf32, #tpu.memory_space<vmem>>, vector<16x16xf32>
    %c0_47 = arith.constant 0 : index
    %c0_48 = arith.constant 0 : index
    %c0_49 = arith.constant 0 : index
    %90 = vector.load %arg10[%c0_47, %c0_48, %c0_49] : memref<2x32x96xf32, #tpu.memory_space<vmem>>, vector<1x32x96xf32>
    %91 = vector.shape_cast %90 : vector<1x32x96xf32> to vector<32x96xf32>
    %cst_50 = arith.constant dense<0.000000e+00> : vector<16x96xf32>
    %92 = tpu.matmul %88, %91, %cst_50 {dimension_numbers = #tpu.dot_dimension_numbers<[1], [0], [0], [1], [0, 0, 1, 1], [], []>} : vector<16x32xf32>, vector<32x96xf32>, vector<16x96xf32> -> vector<16x96xf32>
    %c0_51 = arith.constant 0 : index
    %c0_52 = arith.constant 0 : index
    %c0_53 = arith.constant 0 : index
    %93 = vector.load %arg11[%c0_51, %c0_52, %c0_53] : memref<2x1x96xf32, #tpu.memory_space<vmem>>, vector<1x1x96xf32>
    %94 = vector.shape_cast %93 : vector<1x1x96xf32> to vector<1x96xf32>
    %95 = vector.broadcast %94 : vector<1x96xf32> to vector<16x96xf32>
    %96 = arith.addf %92, %95 : vector<16x96xf32>
    %97 = vector.extract_strided_slice %96 {offsets = [0, 0], sizes = [16, 8], strides = [1, 1]} : vector<16x96xf32> to vector<16x8xf32>
    %98 = vector.extract_strided_slice %96 {offsets = [0, 32], sizes = [16, 8], strides = [1, 1]} : vector<16x96xf32> to vector<16x8xf32>
    %99 = vector.extract_strided_slice %96 {offsets = [0, 64], sizes = [16, 8], strides = [1, 1]} : vector<16x96xf32> to vector<16x8xf32>
    %cst_54 = arith.constant dense<0.000000e+00> : vector<16x16xf32>
    %100 = tpu.matmul %97, %98, %cst_54 {dimension_numbers = #tpu.dot_dimension_numbers<[1], [1], [0], [0], [0, 0, 1, 0], [], []>} : vector<16x8xf32>, vector<16x8xf32>, vector<16x16xf32> -> vector<16x16xf32>
    %cst_55 = arith.constant 0.353553385 : f32
    %101 = vector.broadcast %cst_55 : f32 to vector<16x16xf32>
    %102 = arith.mulf %100, %101 : vector<16x16xf32>
    %103 = arith.addf %102, %89 : vector<16x16xf32>
    %cst_56 = arith.constant dense<0xFF800000> : vector<16xf32>
    %104 = vector.multi_reduction <maximumf>, %103, %cst_56 [1] : vector<16x16xf32> to vector<16xf32>
    %105 = vector.shape_cast %104 : vector<16xf32> to vector<16x1xf32>
    %106 = vector.broadcast %105 : vector<16x1xf32> to vector<16x16xf32>
    %107 = arith.subf %103, %106 : vector<16x16xf32>
    %108 = math.exp %107 : vector<16x16xf32>
    %cst_57 = arith.constant dense<0.000000e+00> : vector<16xf32>
    %109 = vector.multi_reduction <add>, %108, %cst_57 [1] : vector<16x16xf32> to vector<16xf32>
    %110 = vector.shape_cast %109 : vector<16xf32> to vector<16x1xf32>
    %111 = vector.broadcast %110 : vector<16x1xf32> to vector<16x16xf32>
    %112 = arith.divf %108, %111 : vector<16x16xf32>
    %cst_58 = arith.constant dense<0.000000e+00> : vector<16x8xf32>
    %113 = tpu.matmul %112, %99, %cst_58 {dimension_numbers = #tpu.dot_dimension_numbers<[1], [0], [0], [1], [0, 0, 1, 1], [], []>} : vector<16x16xf32>, vector<16x8xf32>, vector<16x8xf32> -> vector<16x8xf32>
    %114 = vector.extract_strided_slice %96 {offsets = [0, 8], sizes = [16, 8], strides = [1, 1]} : vector<16x96xf32> to vector<16x8xf32>
    %115 = vector.extract_strided_slice %96 {offsets = [0, 40], sizes = [16, 8], strides = [1, 1]} : vector<16x96xf32> to vector<16x8xf32>
    %116 = vector.extract_strided_slice %96 {offsets = [0, 72], sizes = [16, 8], strides = [1, 1]} : vector<16x96xf32> to vector<16x8xf32>
    %cst_59 = arith.constant dense<0.000000e+00> : vector<16x16xf32>
    %117 = tpu.matmul %114, %115, %cst_59 {dimension_numbers = #tpu.dot_dimension_numbers<[1], [1], [0], [0], [0, 0, 1, 0], [], []>} : vector<16x8xf32>, vector<16x8xf32>, vector<16x16xf32> -> vector<16x16xf32>
    %cst_60 = arith.constant 0.353553385 : f32
    %118 = vector.broadcast %cst_60 : f32 to vector<16x16xf32>
    %119 = arith.mulf %117, %118 : vector<16x16xf32>
    %120 = arith.addf %119, %89 : vector<16x16xf32>
    %cst_61 = arith.constant dense<0xFF800000> : vector<16xf32>
    %121 = vector.multi_reduction <maximumf>, %120, %cst_61 [1] : vector<16x16xf32> to vector<16xf32>
    %122 = vector.shape_cast %121 : vector<16xf32> to vector<16x1xf32>
    %123 = vector.broadcast %122 : vector<16x1xf32> to vector<16x16xf32>
    %124 = arith.subf %120, %123 : vector<16x16xf32>
    %125 = math.exp %124 : vector<16x16xf32>
    %cst_62 = arith.constant dense<0.000000e+00> : vector<16xf32>
    %126 = vector.multi_reduction <add>, %125, %cst_62 [1] : vector<16x16xf32> to vector<16xf32>
    %127 = vector.shape_cast %126 : vector<16xf32> to vector<16x1xf32>
    %128 = vector.broadcast %127 : vector<16x1xf32> to vector<16x16xf32>
    %129 = arith.divf %125, %128 : vector<16x16xf32>
    %cst_63 = arith.constant dense<0.000000e+00> : vector<16x8xf32>
    %130 = tpu.matmul %129, %116, %cst_63 {dimension_numbers = #tpu.dot_dimension_numbers<[1], [0], [0], [1], [0, 0, 1, 1], [], []>} : vector<16x16xf32>, vector<16x8xf32>, vector<16x8xf32> -> vector<16x8xf32>
    %131 = vector.extract_strided_slice %96 {offsets = [0, 16], sizes = [16, 8], strides = [1, 1]} : vector<16x96xf32> to vector<16x8xf32>
    %132 = vector.extract_strided_slice %96 {offsets = [0, 48], sizes = [16, 8], strides = [1, 1]} : vector<16x96xf32> to vector<16x8xf32>
    %133 = vector.extract_strided_slice %96 {offsets = [0, 80], sizes = [16, 8], strides = [1, 1]} : vector<16x96xf32> to vector<16x8xf32>
    %cst_64 = arith.constant dense<0.000000e+00> : vector<16x16xf32>
    %134 = tpu.matmul %131, %132, %cst_64 {dimension_numbers = #tpu.dot_dimension_numbers<[1], [1], [0], [0], [0, 0, 1, 0], [], []>} : vector<16x8xf32>, vector<16x8xf32>, vector<16x16xf32> -> vector<16x16xf32>
    %cst_65 = arith.constant 0.353553385 : f32
    %135 = vector.broadcast %cst_65 : f32 to vector<16x16xf32>
    %136 = arith.mulf %134, %135 : vector<16x16xf32>
    %137 = arith.addf %136, %89 : vector<16x16xf32>
    %cst_66 = arith.constant dense<0xFF800000> : vector<16xf32>
    %138 = vector.multi_reduction <maximumf>, %137, %cst_66 [1] : vector<16x16xf32> to vector<16xf32>
    %139 = vector.shape_cast %138 : vector<16xf32> to vector<16x1xf32>
    %140 = vector.broadcast %139 : vector<16x1xf32> to vector<16x16xf32>
    %141 = arith.subf %137, %140 : vector<16x16xf32>
    %142 = math.exp %141 : vector<16x16xf32>
    %cst_67 = arith.constant dense<0.000000e+00> : vector<16xf32>
    %143 = vector.multi_reduction <add>, %142, %cst_67 [1] : vector<16x16xf32> to vector<16xf32>
    %144 = vector.shape_cast %143 : vector<16xf32> to vector<16x1xf32>
    %145 = vector.broadcast %144 : vector<16x1xf32> to vector<16x16xf32>
    %146 = arith.divf %142, %145 : vector<16x16xf32>
    %cst_68 = arith.constant dense<0.000000e+00> : vector<16x8xf32>
    %147 = tpu.matmul %146, %133, %cst_68 {dimension_numbers = #tpu.dot_dimension_numbers<[1], [0], [0], [1], [0, 0, 1, 1], [], []>} : vector<16x16xf32>, vector<16x8xf32>, vector<16x8xf32> -> vector<16x8xf32>
    %148 = vector.extract_strided_slice %96 {offsets = [0, 24], sizes = [16, 8], strides = [1, 1]} : vector<16x96xf32> to vector<16x8xf32>
    %149 = vector.extract_strided_slice %96 {offsets = [0, 56], sizes = [16, 8], strides = [1, 1]} : vector<16x96xf32> to vector<16x8xf32>
    %150 = vector.extract_strided_slice %96 {offsets = [0, 88], sizes = [16, 8], strides = [1, 1]} : vector<16x96xf32> to vector<16x8xf32>
    %cst_69 = arith.constant dense<0.000000e+00> : vector<16x16xf32>
    %151 = tpu.matmul %148, %149, %cst_69 {dimension_numbers = #tpu.dot_dimension_numbers<[1], [1], [0], [0], [0, 0, 1, 0], [], []>} : vector<16x8xf32>, vector<16x8xf32>, vector<16x16xf32> -> vector<16x16xf32>
    %cst_70 = arith.constant 0.353553385 : f32
    %152 = vector.broadcast %cst_70 : f32 to vector<16x16xf32>
    %153 = arith.mulf %151, %152 : vector<16x16xf32>
    %154 = arith.addf %153, %89 : vector<16x16xf32>
    %cst_71 = arith.constant dense<0xFF800000> : vector<16xf32>
    %155 = vector.multi_reduction <maximumf>, %154, %cst_71 [1] : vector<16x16xf32> to vector<16xf32>
    %156 = vector.shape_cast %155 : vector<16xf32> to vector<16x1xf32>
    %157 = vector.broadcast %156 : vector<16x1xf32> to vector<16x16xf32>
    %158 = arith.subf %154, %157 : vector<16x16xf32>
    %159 = math.exp %158 : vector<16x16xf32>
    %cst_72 = arith.constant dense<0.000000e+00> : vector<16xf32>
    %160 = vector.multi_reduction <add>, %159, %cst_72 [1] : vector<16x16xf32> to vector<16xf32>
    %161 = vector.shape_cast %160 : vector<16xf32> to vector<16x1xf32>
    %162 = vector.broadcast %161 : vector<16x1xf32> to vector<16x16xf32>
    %163 = arith.divf %159, %162 : vector<16x16xf32>
    %cst_73 = arith.constant dense<0.000000e+00> : vector<16x8xf32>
    %164 = tpu.matmul %163, %150, %cst_73 {dimension_numbers = #tpu.dot_dimension_numbers<[1], [0], [0], [1], [0, 0, 1, 1], [], []>} : vector<16x16xf32>, vector<16x8xf32>, vector<16x8xf32> -> vector<16x8xf32>
    %165 = tpu.concatenate %113, %130, %147, %164 in 1 : vector<16x8xf32>, vector<16x8xf32>, vector<16x8xf32>, vector<16x8xf32> -> vector<16x32xf32>
    %c0_74 = arith.constant 0 : index
    %c0_75 = arith.constant 0 : index
    %c0_76 = arith.constant 0 : index
    %166 = vector.load %arg12[%c0_74, %c0_75, %c0_76] : memref<2x32x32xf32, #tpu.memory_space<vmem>>, vector<1x32x32xf32>
    %167 = vector.shape_cast %166 : vector<1x32x32xf32> to vector<32x32xf32>
    %cst_77 = arith.constant dense<0.000000e+00> : vector<16x32xf32>
    %168 = tpu.matmul %165, %167, %cst_77 {dimension_numbers = #tpu.dot_dimension_numbers<[1], [0], [0], [1], [0, 0, 1, 1], [], []>} : vector<16x32xf32>, vector<32x32xf32>, vector<16x32xf32> -> vector<16x32xf32>
    %c0_78 = arith.constant 0 : index
    %c0_79 = arith.constant 0 : index
    %c0_80 = arith.constant 0 : index
    %c0_81 = arith.constant 0 : index
    %169 = vector.load %arg13[%c0_78, %c0_79, %c0_80, %c0_81] : memref<2x6x1x32xf32, #tpu.memory_space<vmem>>, vector<1x1x1x32xf32>
    %170 = vector.shape_cast %169 : vector<1x1x1x32xf32> to vector<1x32xf32>
    %171 = vector.broadcast %170 : vector<1x32xf32> to vector<16x32xf32>
    %172 = arith.addf %168, %171 : vector<16x32xf32>
    %173 = arith.addf %172, %88 : vector<16x32xf32>
    %c0_82 = arith.constant 0 : index
    %c1_83 = arith.constant 1 : index
    %c0_84 = arith.constant 0 : index
    %c0_85 = arith.constant 0 : index
    %174 = vector.load %arg13[%c0_82, %c1_83, %c0_84, %c0_85] : memref<2x6x1x32xf32, #tpu.memory_space<vmem>>, vector<1x1x1x32xf32>
    %175 = vector.shape_cast %174 : vector<1x1x1x32xf32> to vector<1x32xf32>
    %c0_86 = arith.constant 0 : index
    %c2_87 = arith.constant 2 : index
    %c0_88 = arith.constant 0 : index
    %c0_89 = arith.constant 0 : index
    %176 = vector.load %arg13[%c0_86, %c2_87, %c0_88, %c0_89] : memref<2x6x1x32xf32, #tpu.memory_space<vmem>>, vector<1x1x1x32xf32>
    %177 = vector.shape_cast %176 : vector<1x1x1x32xf32> to vector<1x32xf32>
    %cst_90 = arith.constant dense<0.000000e+00> : vector<16xf32>
    %178 = vector.multi_reduction <add>, %173, %cst_90 [1] : vector<16x32xf32> to vector<16xf32>
    %179 = vector.shape_cast %178 : vector<16xf32> to vector<16x1xf32>
    %cst_91 = arith.constant 3.200000e+01 : f32
    %180 = vector.broadcast %cst_91 : f32 to vector<16x1xf32>
    %181 = arith.divf %179, %180 : vector<16x1xf32>
    %182 = vector.broadcast %181 : vector<16x1xf32> to vector<16x32xf32>
    %183 = arith.subf %173, %182 : vector<16x32xf32>
    %184 = arith.mulf %183, %183 : vector<16x32xf32>
    %cst_92 = arith.constant dense<0.000000e+00> : vector<16xf32>
    %185 = vector.multi_reduction <add>, %184, %cst_92 [1] : vector<16x32xf32> to vector<16xf32>
    %186 = vector.shape_cast %185 : vector<16xf32> to vector<16x1xf32>
    %cst_93 = arith.constant 3.200000e+01 : f32
    %187 = vector.broadcast %cst_93 : f32 to vector<16x1xf32>
    %188 = arith.divf %186, %187 : vector<16x1xf32>
    %189 = vector.broadcast %181 : vector<16x1xf32> to vector<16x32xf32>
    %190 = arith.subf %173, %189 : vector<16x32xf32>
    %cst_94 = arith.constant 9.99999996E-13 : f32
    %191 = vector.broadcast %cst_94 : f32 to vector<16x1xf32>
    %192 = arith.addf %188, %191 : vector<16x1xf32>
    %193 = math.rsqrt %192 : vector<16x1xf32>
    %194 = vector.broadcast %193 : vector<16x1xf32> to vector<16x32xf32>
    %195 = arith.mulf %190, %194 : vector<16x32xf32>
    %196 = vector.broadcast %175 : vector<1x32xf32> to vector<16x32xf32>
    %197 = arith.mulf %195, %196 : vector<16x32xf32>
    %198 = vector.broadcast %177 : vector<1x32xf32> to vector<16x32xf32>
    %199 = arith.addf %197, %198 : vector<16x32xf32>
    %c0_95 = arith.constant 0 : index
    %c0_96 = arith.constant 0 : index
    %c0_97 = arith.constant 0 : index
    %200 = vector.load %arg14[%c0_95, %c0_96, %c0_97] : memref<2x32x64xf32, #tpu.memory_space<vmem>>, vector<1x32x64xf32>
    %201 = vector.shape_cast %200 : vector<1x32x64xf32> to vector<32x64xf32>
    %cst_98 = arith.constant dense<0.000000e+00> : vector<16x64xf32>
    %202 = tpu.matmul %199, %201, %cst_98 {dimension_numbers = #tpu.dot_dimension_numbers<[1], [0], [0], [1], [0, 0, 1, 1], [], []>} : vector<16x32xf32>, vector<32x64xf32>, vector<16x64xf32> -> vector<16x64xf32>
    %c0_99 = arith.constant 0 : index
    %c0_100 = arith.constant 0 : index
    %c0_101 = arith.constant 0 : index
    %203 = vector.load %arg15[%c0_99, %c0_100, %c0_101] : memref<2x1x64xf32, #tpu.memory_space<vmem>>, vector<1x1x64xf32>
    %204 = vector.shape_cast %203 : vector<1x1x64xf32> to vector<1x64xf32>
    %205 = vector.broadcast %204 : vector<1x64xf32> to vector<16x64xf32>
    %206 = arith.addf %202, %205 : vector<16x64xf32>
    %207 = arith.mulf %206, %206 : vector<16x64xf32>
    %208 = arith.mulf %206, %207 : vector<16x64xf32>
    %cst_102 = arith.constant 4.471500e-02 : f32
    %209 = vector.broadcast %cst_102 : f32 to vector<16x64xf32>
    %210 = arith.mulf %209, %208 : vector<16x64xf32>
    %211 = arith.addf %206, %210 : vector<16x64xf32>
    %cst_103 = arith.constant 0.797884583 : f32
    %212 = vector.broadcast %cst_103 : f32 to vector<16x64xf32>
    %213 = arith.mulf %212, %211 : vector<16x64xf32>
    %214 = math.tanh %213 : vector<16x64xf32>
    %cst_104 = arith.constant 1.000000e+00 : f32
    %215 = vector.broadcast %cst_104 : f32 to vector<16x64xf32>
    %216 = arith.addf %215, %214 : vector<16x64xf32>
    %cst_105 = arith.constant 5.000000e-01 : f32
    %217 = vector.broadcast %cst_105 : f32 to vector<16x64xf32>
    %218 = arith.mulf %217, %216 : vector<16x64xf32>
    %219 = arith.mulf %206, %218 : vector<16x64xf32>
    %c0_106 = arith.constant 0 : index
    %c0_107 = arith.constant 0 : index
    %c0_108 = arith.constant 0 : index
    %220 = vector.load %arg16[%c0_106, %c0_107, %c0_108] : memref<2x64x32xf32, #tpu.memory_space<vmem>>, vector<1x64x32xf32>
    %221 = vector.shape_cast %220 : vector<1x64x32xf32> to vector<64x32xf32>
    %cst_109 = arith.constant dense<0.000000e+00> : vector<16x32xf32>
    %222 = tpu.matmul %219, %221, %cst_109 {dimension_numbers = #tpu.dot_dimension_numbers<[1], [0], [0], [1], [0, 0, 1, 1], [], []>} : vector<16x64xf32>, vector<64x32xf32>, vector<16x32xf32> -> vector<16x32xf32>
    %c0_110 = arith.constant 0 : index
    %c3_111 = arith.constant 3 : index
    %c0_112 = arith.constant 0 : index
    %c0_113 = arith.constant 0 : index
    %223 = vector.load %arg13[%c0_110, %c3_111, %c0_112, %c0_113] : memref<2x6x1x32xf32, #tpu.memory_space<vmem>>, vector<1x1x1x32xf32>
    %224 = vector.shape_cast %223 : vector<1x1x1x32xf32> to vector<1x32xf32>
    %225 = vector.broadcast %224 : vector<1x32xf32> to vector<16x32xf32>
    %226 = arith.addf %222, %225 : vector<16x32xf32>
    %227 = arith.addf %226, %199 : vector<16x32xf32>
    %c0_114 = arith.constant 0 : index
    %c4_115 = arith.constant 4 : index
    %c0_116 = arith.constant 0 : index
    %c0_117 = arith.constant 0 : index
    %228 = vector.load %arg13[%c0_114, %c4_115, %c0_116, %c0_117] : memref<2x6x1x32xf32, #tpu.memory_space<vmem>>, vector<1x1x1x32xf32>
    %229 = vector.shape_cast %228 : vector<1x1x1x32xf32> to vector<1x32xf32>
    %c0_118 = arith.constant 0 : index
    %c5 = arith.constant 5 : index
    %c0_119 = arith.constant 0 : index
    %c0_120 = arith.constant 0 : index
    %230 = vector.load %arg13[%c0_118, %c5, %c0_119, %c0_120] : memref<2x6x1x32xf32, #tpu.memory_space<vmem>>, vector<1x1x1x32xf32>
    %231 = vector.shape_cast %230 : vector<1x1x1x32xf32> to vector<1x32xf32>
    %cst_121 = arith.constant dense<0.000000e+00> : vector<16xf32>
    %232 = vector.multi_reduction <add>, %227, %cst_121 [1] : vector<16x32xf32> to vector<16xf32>
    %233 = vector.shape_cast %232 : vector<16xf32> to vector<16x1xf32>
    %cst_122 = arith.constant 3.200000e+01 : f32
    %234 = vector.broadcast %cst_122 : f32 to vector<16x1xf32>
    %235 = arith.divf %233, %234 : vector<16x1xf32>
    %236 = vector.broadcast %235 : vector<16x1xf32> to vector<16x32xf32>
    %237 = arith.subf %227, %236 : vector<16x32xf32>
    %238 = arith.mulf %237, %237 : vector<16x32xf32>
    %cst_123 = arith.constant dense<0.000000e+00> : vector<16xf32>
    %239 = vector.multi_reduction <add>, %238, %cst_123 [1] : vector<16x32xf32> to vector<16xf32>
    %240 = vector.shape_cast %239 : vector<16xf32> to vector<16x1xf32>
    %cst_124 = arith.constant 3.200000e+01 : f32
    %241 = vector.broadcast %cst_124 : f32 to vector<16x1xf32>
    %242 = arith.divf %240, %241 : vector<16x1xf32>
    %243 = vector.broadcast %235 : vector<16x1xf32> to vector<16x32xf32>
    %244 = arith.subf %227, %243 : vector<16x32xf32>
    %cst_125 = arith.constant 9.99999996E-13 : f32
    %245 = vector.broadcast %cst_125 : f32 to vector<16x1xf32>
    %246 = arith.addf %242, %245 : vector<16x1xf32>
    %247 = math.rsqrt %246 : vector<16x1xf32>
    %248 = vector.broadcast %247 : vector<16x1xf32> to vector<16x32xf32>
    %249 = arith.mulf %244, %248 : vector<16x32xf32>
    %250 = vector.broadcast %229 : vector<1x32xf32> to vector<16x32xf32>
    %251 = arith.mulf %249, %250 : vector<16x32xf32>
    %252 = vector.broadcast %231 : vector<1x32xf32> to vector<16x32xf32>
    %253 = arith.addf %251, %252 : vector<16x32xf32>
    %c1_126 = arith.constant 1 : index
    %c0_127 = arith.constant 0 : index
    %c0_128 = arith.constant 0 : index
    %254 = vector.load %arg10[%c1_126, %c0_127, %c0_128] : memref<2x32x96xf32, #tpu.memory_space<vmem>>, vector<1x32x96xf32>
    %255 = vector.shape_cast %254 : vector<1x32x96xf32> to vector<32x96xf32>
    %cst_129 = arith.constant dense<0.000000e+00> : vector<16x96xf32>
    %256 = tpu.matmul %253, %255, %cst_129 {dimension_numbers = #tpu.dot_dimension_numbers<[1], [0], [0], [1], [0, 0, 1, 1], [], []>} : vector<16x32xf32>, vector<32x96xf32>, vector<16x96xf32> -> vector<16x96xf32>
    %c1_130 = arith.constant 1 : index
    %c0_131 = arith.constant 0 : index
    %c0_132 = arith.constant 0 : index
    %257 = vector.load %arg11[%c1_130, %c0_131, %c0_132] : memref<2x1x96xf32, #tpu.memory_space<vmem>>, vector<1x1x96xf32>
    %258 = vector.shape_cast %257 : vector<1x1x96xf32> to vector<1x96xf32>
    %259 = vector.broadcast %258 : vector<1x96xf32> to vector<16x96xf32>
    %260 = arith.addf %256, %259 : vector<16x96xf32>
    %261 = vector.extract_strided_slice %260 {offsets = [0, 0], sizes = [16, 8], strides = [1, 1]} : vector<16x96xf32> to vector<16x8xf32>
    %262 = vector.extract_strided_slice %260 {offsets = [0, 32], sizes = [16, 8], strides = [1, 1]} : vector<16x96xf32> to vector<16x8xf32>
    %263 = vector.extract_strided_slice %260 {offsets = [0, 64], sizes = [16, 8], strides = [1, 1]} : vector<16x96xf32> to vector<16x8xf32>
    %cst_133 = arith.constant dense<0.000000e+00> : vector<16x16xf32>
    %264 = tpu.matmul %261, %262, %cst_133 {dimension_numbers = #tpu.dot_dimension_numbers<[1], [1], [0], [0], [0, 0, 1, 0], [], []>} : vector<16x8xf32>, vector<16x8xf32>, vector<16x16xf32> -> vector<16x16xf32>
    %cst_134 = arith.constant 0.353553385 : f32
    %265 = vector.broadcast %cst_134 : f32 to vector<16x16xf32>
    %266 = arith.mulf %264, %265 : vector<16x16xf32>
    %267 = arith.addf %266, %89 : vector<16x16xf32>
    %cst_135 = arith.constant dense<0xFF800000> : vector<16xf32>
    %268 = vector.multi_reduction <maximumf>, %267, %cst_135 [1] : vector<16x16xf32> to vector<16xf32>
    %269 = vector.shape_cast %268 : vector<16xf32> to vector<16x1xf32>
    %270 = vector.broadcast %269 : vector<16x1xf32> to vector<16x16xf32>
    %271 = arith.subf %267, %270 : vector<16x16xf32>
    %272 = math.exp %271 : vector<16x16xf32>
    %cst_136 = arith.constant dense<0.000000e+00> : vector<16xf32>
    %273 = vector.multi_reduction <add>, %272, %cst_136 [1] : vector<16x16xf32> to vector<16xf32>
    %274 = vector.shape_cast %273 : vector<16xf32> to vector<16x1xf32>
    %275 = vector.broadcast %274 : vector<16x1xf32> to vector<16x16xf32>
    %276 = arith.divf %272, %275 : vector<16x16xf32>
    %cst_137 = arith.constant dense<0.000000e+00> : vector<16x8xf32>
    %277 = tpu.matmul %276, %263, %cst_137 {dimension_numbers = #tpu.dot_dimension_numbers<[1], [0], [0], [1], [0, 0, 1, 1], [], []>} : vector<16x16xf32>, vector<16x8xf32>, vector<16x8xf32> -> vector<16x8xf32>
    %278 = vector.extract_strided_slice %260 {offsets = [0, 8], sizes = [16, 8], strides = [1, 1]} : vector<16x96xf32> to vector<16x8xf32>
    %279 = vector.extract_strided_slice %260 {offsets = [0, 40], sizes = [16, 8], strides = [1, 1]} : vector<16x96xf32> to vector<16x8xf32>
    %280 = vector.extract_strided_slice %260 {offsets = [0, 72], sizes = [16, 8], strides = [1, 1]} : vector<16x96xf32> to vector<16x8xf32>
    %cst_138 = arith.constant dense<0.000000e+00> : vector<16x16xf32>
    %281 = tpu.matmul %278, %279, %cst_138 {dimension_numbers = #tpu.dot_dimension_numbers<[1], [1], [0], [0], [0, 0, 1, 0], [], []>} : vector<16x8xf32>, vector<16x8xf32>, vector<16x16xf32> -> vector<16x16xf32>
    %cst_139 = arith.constant 0.353553385 : f32
    %282 = vector.broadcast %cst_139 : f32 to vector<16x16xf32>
    %283 = arith.mulf %281, %282 : vector<16x16xf32>
    %284 = arith.addf %283, %89 : vector<16x16xf32>
    %cst_140 = arith.constant dense<0xFF800000> : vector<16xf32>
    %285 = vector.multi_reduction <maximumf>, %284, %cst_140 [1] : vector<16x16xf32> to vector<16xf32>
    %286 = vector.shape_cast %285 : vector<16xf32> to vector<16x1xf32>
    %287 = vector.broadcast %286 : vector<16x1xf32> to vector<16x16xf32>
    %288 = arith.subf %284, %287 : vector<16x16xf32>
    %289 = math.exp %288 : vector<16x16xf32>
    %cst_141 = arith.constant dense<0.000000e+00> : vector<16xf32>
    %290 = vector.multi_reduction <add>, %289, %cst_141 [1] : vector<16x16xf32> to vector<16xf32>
    %291 = vector.shape_cast %290 : vector<16xf32> to vector<16x1xf32>
    %292 = vector.broadcast %291 : vector<16x1xf32> to vector<16x16xf32>
    %293 = arith.divf %289, %292 : vector<16x16xf32>
    %cst_142 = arith.constant dense<0.000000e+00> : vector<16x8xf32>
    %294 = tpu.matmul %293, %280, %cst_142 {dimension_numbers = #tpu.dot_dimension_numbers<[1], [0], [0], [1], [0, 0, 1, 1], [], []>} : vector<16x16xf32>, vector<16x8xf32>, vector<16x8xf32> -> vector<16x8xf32>
    %295 = vector.extract_strided_slice %260 {offsets = [0, 16], sizes = [16, 8], strides = [1, 1]} : vector<16x96xf32> to vector<16x8xf32>
    %296 = vector.extract_strided_slice %260 {offsets = [0, 48], sizes = [16, 8], strides = [1, 1]} : vector<16x96xf32> to vector<16x8xf32>
    %297 = vector.extract_strided_slice %260 {offsets = [0, 80], sizes = [16, 8], strides = [1, 1]} : vector<16x96xf32> to vector<16x8xf32>
    %cst_143 = arith.constant dense<0.000000e+00> : vector<16x16xf32>
    %298 = tpu.matmul %295, %296, %cst_143 {dimension_numbers = #tpu.dot_dimension_numbers<[1], [1], [0], [0], [0, 0, 1, 0], [], []>} : vector<16x8xf32>, vector<16x8xf32>, vector<16x16xf32> -> vector<16x16xf32>
    %cst_144 = arith.constant 0.353553385 : f32
    %299 = vector.broadcast %cst_144 : f32 to vector<16x16xf32>
    %300 = arith.mulf %298, %299 : vector<16x16xf32>
    %301 = arith.addf %300, %89 : vector<16x16xf32>
    %cst_145 = arith.constant dense<0xFF800000> : vector<16xf32>
    %302 = vector.multi_reduction <maximumf>, %301, %cst_145 [1] : vector<16x16xf32> to vector<16xf32>
    %303 = vector.shape_cast %302 : vector<16xf32> to vector<16x1xf32>
    %304 = vector.broadcast %303 : vector<16x1xf32> to vector<16x16xf32>
    %305 = arith.subf %301, %304 : vector<16x16xf32>
    %306 = math.exp %305 : vector<16x16xf32>
    %cst_146 = arith.constant dense<0.000000e+00> : vector<16xf32>
    %307 = vector.multi_reduction <add>, %306, %cst_146 [1] : vector<16x16xf32> to vector<16xf32>
    %308 = vector.shape_cast %307 : vector<16xf32> to vector<16x1xf32>
    %309 = vector.broadcast %308 : vector<16x1xf32> to vector<16x16xf32>
    %310 = arith.divf %306, %309 : vector<16x16xf32>
    %cst_147 = arith.constant dense<0.000000e+00> : vector<16x8xf32>
    %311 = tpu.matmul %310, %297, %cst_147 {dimension_numbers = #tpu.dot_dimension_numbers<[1], [0], [0], [1], [0, 0, 1, 1], [], []>} : vector<16x16xf32>, vector<16x8xf32>, vector<16x8xf32> -> vector<16x8xf32>
    %312 = vector.extract_strided_slice %260 {offsets = [0, 24], sizes = [16, 8], strides = [1, 1]} : vector<16x96xf32> to vector<16x8xf32>
    %313 = vector.extract_strided_slice %260 {offsets = [0, 56], sizes = [16, 8], strides = [1, 1]} : vector<16x96xf32> to vector<16x8xf32>
    %314 = vector.extract_strided_slice %260 {offsets = [0, 88], sizes = [16, 8], strides = [1, 1]} : vector<16x96xf32> to vector<16x8xf32>
    %cst_148 = arith.constant dense<0.000000e+00> : vector<16x16xf32>
    %315 = tpu.matmul %312, %313, %cst_148 {dimension_numbers = #tpu.dot_dimension_numbers<[1], [1], [0], [0], [0, 0, 1, 0], [], []>} : vector<16x8xf32>, vector<16x8xf32>, vector<16x16xf32> -> vector<16x16xf32>
    %cst_149 = arith.constant 0.353553385 : f32
    %316 = vector.broadcast %cst_149 : f32 to vector<16x16xf32>
    %317 = arith.mulf %315, %316 : vector<16x16xf32>
    %318 = arith.addf %317, %89 : vector<16x16xf32>
    %cst_150 = arith.constant dense<0xFF800000> : vector<16xf32>
    %319 = vector.multi_reduction <maximumf>, %318, %cst_150 [1] : vector<16x16xf32> to vector<16xf32>
    %320 = vector.shape_cast %319 : vector<16xf32> to vector<16x1xf32>
    %321 = vector.broadcast %320 : vector<16x1xf32> to vector<16x16xf32>
    %322 = arith.subf %318, %321 : vector<16x16xf32>
    %323 = math.exp %322 : vector<16x16xf32>
    %cst_151 = arith.constant dense<0.000000e+00> : vector<16xf32>
    %324 = vector.multi_reduction <add>, %323, %cst_151 [1] : vector<16x16xf32> to vector<16xf32>
    %325 = vector.shape_cast %324 : vector<16xf32> to vector<16x1xf32>
    %326 = vector.broadcast %325 : vector<16x1xf32> to vector<16x16xf32>
    %327 = arith.divf %323, %326 : vector<16x16xf32>
    %cst_152 = arith.constant dense<0.000000e+00> : vector<16x8xf32>
    %328 = tpu.matmul %327, %314, %cst_152 {dimension_numbers = #tpu.dot_dimension_numbers<[1], [0], [0], [1], [0, 0, 1, 1], [], []>} : vector<16x16xf32>, vector<16x8xf32>, vector<16x8xf32> -> vector<16x8xf32>
    %329 = tpu.concatenate %277, %294, %311, %328 in 1 : vector<16x8xf32>, vector<16x8xf32>, vector<16x8xf32>, vector<16x8xf32> -> vector<16x32xf32>
    %c1_153 = arith.constant 1 : index
    %c0_154 = arith.constant 0 : index
    %c0_155 = arith.constant 0 : index
    %330 = vector.load %arg12[%c1_153, %c0_154, %c0_155] : memref<2x32x32xf32, #tpu.memory_space<vmem>>, vector<1x32x32xf32>
    %331 = vector.shape_cast %330 : vector<1x32x32xf32> to vector<32x32xf32>
    %cst_156 = arith.constant dense<0.000000e+00> : vector<16x32xf32>
    %332 = tpu.matmul %329, %331, %cst_156 {dimension_numbers = #tpu.dot_dimension_numbers<[1], [0], [0], [1], [0, 0, 1, 1], [], []>} : vector<16x32xf32>, vector<32x32xf32>, vector<16x32xf32> -> vector<16x32xf32>
    %c1_157 = arith.constant 1 : index
    %c0_158 = arith.constant 0 : index
    %c0_159 = arith.constant 0 : index
    %c0_160 = arith.constant 0 : index
    %333 = vector.load %arg13[%c1_157, %c0_158, %c0_159, %c0_160] : memref<2x6x1x32xf32, #tpu.memory_space<vmem>>, vector<1x1x1x32xf32>
    %334 = vector.shape_cast %333 : vector<1x1x1x32xf32> to vector<1x32xf32>
    %335 = vector.broadcast %334 : vector<1x32xf32> to vector<16x32xf32>
    %336 = arith.addf %332, %335 : vector<16x32xf32>
    %337 = arith.addf %336, %253 : vector<16x32xf32>
    %c1_161 = arith.constant 1 : index
    %c1_162 = arith.constant 1 : index
    %c0_163 = arith.constant 0 : index
    %c0_164 = arith.constant 0 : index
    %338 = vector.load %arg13[%c1_161, %c1_162, %c0_163, %c0_164] : memref<2x6x1x32xf32, #tpu.memory_space<vmem>>, vector<1x1x1x32xf32>
    %339 = vector.shape_cast %338 : vector<1x1x1x32xf32> to vector<1x32xf32>
    %c1_165 = arith.constant 1 : index
    %c2_166 = arith.constant 2 : index
    %c0_167 = arith.constant 0 : index
    %c0_168 = arith.constant 0 : index
    %340 = vector.load %arg13[%c1_165, %c2_166, %c0_167, %c0_168] : memref<2x6x1x32xf32, #tpu.memory_space<vmem>>, vector<1x1x1x32xf32>
    %341 = vector.shape_cast %340 : vector<1x1x1x32xf32> to vector<1x32xf32>
    %cst_169 = arith.constant dense<0.000000e+00> : vector<16xf32>
    %342 = vector.multi_reduction <add>, %337, %cst_169 [1] : vector<16x32xf32> to vector<16xf32>
    %343 = vector.shape_cast %342 : vector<16xf32> to vector<16x1xf32>
    %cst_170 = arith.constant 3.200000e+01 : f32
    %344 = vector.broadcast %cst_170 : f32 to vector<16x1xf32>
    %345 = arith.divf %343, %344 : vector<16x1xf32>
    %346 = vector.broadcast %345 : vector<16x1xf32> to vector<16x32xf32>
    %347 = arith.subf %337, %346 : vector<16x32xf32>
    %348 = arith.mulf %347, %347 : vector<16x32xf32>
    %cst_171 = arith.constant dense<0.000000e+00> : vector<16xf32>
    %349 = vector.multi_reduction <add>, %348, %cst_171 [1] : vector<16x32xf32> to vector<16xf32>
    %350 = vector.shape_cast %349 : vector<16xf32> to vector<16x1xf32>
    %cst_172 = arith.constant 3.200000e+01 : f32
    %351 = vector.broadcast %cst_172 : f32 to vector<16x1xf32>
    %352 = arith.divf %350, %351 : vector<16x1xf32>
    %353 = vector.broadcast %345 : vector<16x1xf32> to vector<16x32xf32>
    %354 = arith.subf %337, %353 : vector<16x32xf32>
    %cst_173 = arith.constant 9.99999996E-13 : f32
    %355 = vector.broadcast %cst_173 : f32 to vector<16x1xf32>
    %356 = arith.addf %352, %355 : vector<16x1xf32>
    %357 = math.rsqrt %356 : vector<16x1xf32>
    %358 = vector.broadcast %357 : vector<16x1xf32> to vector<16x32xf32>
    %359 = arith.mulf %354, %358 : vector<16x32xf32>
    %360 = vector.broadcast %339 : vector<1x32xf32> to vector<16x32xf32>
    %361 = arith.mulf %359, %360 : vector<16x32xf32>
    %362 = vector.broadcast %341 : vector<1x32xf32> to vector<16x32xf32>
    %363 = arith.addf %361, %362 : vector<16x32xf32>
    %c1_174 = arith.constant 1 : index
    %c0_175 = arith.constant 0 : index
    %c0_176 = arith.constant 0 : index
    %364 = vector.load %arg14[%c1_174, %c0_175, %c0_176] : memref<2x32x64xf32, #tpu.memory_space<vmem>>, vector<1x32x64xf32>
    %365 = vector.shape_cast %364 : vector<1x32x64xf32> to vector<32x64xf32>
    %cst_177 = arith.constant dense<0.000000e+00> : vector<16x64xf32>
    %366 = tpu.matmul %363, %365, %cst_177 {dimension_numbers = #tpu.dot_dimension_numbers<[1], [0], [0], [1], [0, 0, 1, 1], [], []>} : vector<16x32xf32>, vector<32x64xf32>, vector<16x64xf32> -> vector<16x64xf32>
    %c1_178 = arith.constant 1 : index
    %c0_179 = arith.constant 0 : index
    %c0_180 = arith.constant 0 : index
    %367 = vector.load %arg15[%c1_178, %c0_179, %c0_180] : memref<2x1x64xf32, #tpu.memory_space<vmem>>, vector<1x1x64xf32>
    %368 = vector.shape_cast %367 : vector<1x1x64xf32> to vector<1x64xf32>
    %369 = vector.broadcast %368 : vector<1x64xf32> to vector<16x64xf32>
    %370 = arith.addf %366, %369 : vector<16x64xf32>
    %371 = arith.mulf %370, %370 : vector<16x64xf32>
    %372 = arith.mulf %370, %371 : vector<16x64xf32>
    %cst_181 = arith.constant 4.471500e-02 : f32
    %373 = vector.broadcast %cst_181 : f32 to vector<16x64xf32>
    %374 = arith.mulf %373, %372 : vector<16x64xf32>
    %375 = arith.addf %370, %374 : vector<16x64xf32>
    %cst_182 = arith.constant 0.797884583 : f32
    %376 = vector.broadcast %cst_182 : f32 to vector<16x64xf32>
    %377 = arith.mulf %376, %375 : vector<16x64xf32>
    %378 = math.tanh %377 : vector<16x64xf32>
    %cst_183 = arith.constant 1.000000e+00 : f32
    %379 = vector.broadcast %cst_183 : f32 to vector<16x64xf32>
    %380 = arith.addf %379, %378 : vector<16x64xf32>
    %cst_184 = arith.constant 5.000000e-01 : f32
    %381 = vector.broadcast %cst_184 : f32 to vector<16x64xf32>
    %382 = arith.mulf %381, %380 : vector<16x64xf32>
    %383 = arith.mulf %370, %382 : vector<16x64xf32>
    %c1_185 = arith.constant 1 : index
    %c0_186 = arith.constant 0 : index
    %c0_187 = arith.constant 0 : index
    %384 = vector.load %arg16[%c1_185, %c0_186, %c0_187] : memref<2x64x32xf32, #tpu.memory_space<vmem>>, vector<1x64x32xf32>
    %385 = vector.shape_cast %384 : vector<1x64x32xf32> to vector<64x32xf32>
    %cst_188 = arith.constant dense<0.000000e+00> : vector<16x32xf32>
    %386 = tpu.matmul %383, %385, %cst_188 {dimension_numbers = #tpu.dot_dimension_numbers<[1], [0], [0], [1], [0, 0, 1, 1], [], []>} : vector<16x64xf32>, vector<64x32xf32>, vector<16x32xf32> -> vector<16x32xf32>
    %c1_189 = arith.constant 1 : index
    %c3_190 = arith.constant 3 : index
    %c0_191 = arith.constant 0 : index
    %c0_192 = arith.constant 0 : index
    %387 = vector.load %arg13[%c1_189, %c3_190, %c0_191, %c0_192] : memref<2x6x1x32xf32, #tpu.memory_space<vmem>>, vector<1x1x1x32xf32>
    %388 = vector.shape_cast %387 : vector<1x1x1x32xf32> to vector<1x32xf32>
    %389 = vector.broadcast %388 : vector<1x32xf32> to vector<16x32xf32>
    %390 = arith.addf %386, %389 : vector<16x32xf32>
    %391 = arith.addf %390, %363 : vector<16x32xf32>
    %c1_193 = arith.constant 1 : index
    %c4_194 = arith.constant 4 : index
    %c0_195 = arith.constant 0 : index
    %c0_196 = arith.constant 0 : index
    %392 = vector.load %arg13[%c1_193, %c4_194, %c0_195, %c0_196] : memref<2x6x1x32xf32, #tpu.memory_space<vmem>>, vector<1x1x1x32xf32>
    %393 = vector.shape_cast %392 : vector<1x1x1x32xf32> to vector<1x32xf32>
    %c1_197 = arith.constant 1 : index
    %c5_198 = arith.constant 5 : index
    %c0_199 = arith.constant 0 : index
    %c0_200 = arith.constant 0 : index
    %394 = vector.load %arg13[%c1_197, %c5_198, %c0_199, %c0_200] : memref<2x6x1x32xf32, #tpu.memory_space<vmem>>, vector<1x1x1x32xf32>
    %395 = vector.shape_cast %394 : vector<1x1x1x32xf32> to vector<1x32xf32>
    %cst_201 = arith.constant dense<0.000000e+00> : vector<16xf32>
    %396 = vector.multi_reduction <add>, %391, %cst_201 [1] : vector<16x32xf32> to vector<16xf32>
    %397 = vector.shape_cast %396 : vector<16xf32> to vector<16x1xf32>
    %cst_202 = arith.constant 3.200000e+01 : f32
    %398 = vector.broadcast %cst_202 : f32 to vector<16x1xf32>
    %399 = arith.divf %397, %398 : vector<16x1xf32>
    %400 = vector.broadcast %399 : vector<16x1xf32> to vector<16x32xf32>
    %401 = arith.subf %391, %400 : vector<16x32xf32>
    %402 = arith.mulf %401, %401 : vector<16x32xf32>
    %cst_203 = arith.constant dense<0.000000e+00> : vector<16xf32>
    %403 = vector.multi_reduction <add>, %402, %cst_203 [1] : vector<16x32xf32> to vector<16xf32>
    %404 = vector.shape_cast %403 : vector<16xf32> to vector<16x1xf32>
    %cst_204 = arith.constant 3.200000e+01 : f32
    %405 = vector.broadcast %cst_204 : f32 to vector<16x1xf32>
    %406 = arith.divf %404, %405 : vector<16x1xf32>
    %407 = vector.broadcast %399 : vector<16x1xf32> to vector<16x32xf32>
    %408 = arith.subf %391, %407 : vector<16x32xf32>
    %cst_205 = arith.constant 9.99999996E-13 : f32
    %409 = vector.broadcast %cst_205 : f32 to vector<16x1xf32>
    %410 = arith.addf %406, %409 : vector<16x1xf32>
    %411 = math.rsqrt %410 : vector<16x1xf32>
    %412 = vector.broadcast %411 : vector<16x1xf32> to vector<16x32xf32>
    %413 = arith.mulf %408, %412 : vector<16x32xf32>
    %414 = vector.broadcast %393 : vector<1x32xf32> to vector<16x32xf32>
    %415 = arith.mulf %413, %414 : vector<16x32xf32>
    %416 = vector.broadcast %395 : vector<1x32xf32> to vector<16x32xf32>
    %417 = arith.addf %415, %416 : vector<16x32xf32>
    %c0_206 = arith.constant 0 : index
    %c0_207 = arith.constant 0 : index
    %418 = vector.load %arg5[%c0_206, %c0_207] : memref<2x16xf32, #tpu.memory_space<vmem>>, vector<2x16xf32>
    %cst_208 = arith.constant dense<0.000000e+00> : vector<2x32xf32>
    %419 = tpu.matmul %418, %417, %cst_208 {dimension_numbers = #tpu.dot_dimension_numbers<[1], [0], [0], [1], [0, 0, 1, 1], [], []>} : vector<2x16xf32>, vector<16x32xf32>, vector<2x32xf32> -> vector<2x32xf32>
    %c0_209 = arith.constant 0 : index
    %c0_210 = arith.constant 0 : index
    %420 = vector.load %arg17[%c0_209, %c0_210] : memref<32x10xf32, #tpu.memory_space<vmem>>, vector<32x10xf32>
    %cst_211 = arith.constant dense<0.000000e+00> : vector<2x10xf32>
    %421 = tpu.matmul %419, %420, %cst_211 {dimension_numbers = #tpu.dot_dimension_numbers<[1], [0], [0], [1], [0, 0, 1, 1], [], []>} : vector<2x32xf32>, vector<32x10xf32>, vector<2x10xf32> -> vector<2x10xf32>
    %c0_212 = arith.constant 0 : index
    %c0_213 = arith.constant 0 : index
    %422 = vector.load %arg18[%c0_212, %c0_213] : memref<1x10xf32, #tpu.memory_space<vmem>>, vector<1x10xf32>
    %423 = vector.broadcast %422 : vector<1x10xf32> to vector<2x10xf32>
    %424 = arith.addf %421, %423 : vector<2x10xf32>
    %c0_214 = arith.constant 0 : index
    %c0_215 = arith.constant 0 : index
    %425 = vector.load %arg19[%c0_214, %c0_215] : memref<2x10xf32, #tpu.memory_space<vmem>>, vector<2x10xf32>
    tpu.vector_store %arg19[%c0_214, %c0_215], %424 {strides = array<i32>} : memref<2x10xf32, #tpu.memory_space<vmem>>, vector<2x10xf32>,
    return
  }
}

</mosaic_0001>

<bundles_post_ra>
// kernel: bert_model_forward.1
= control target key start
LH: loop header
LB: loop body
LE: loop exit
PB: predicated region body
PF: predicated region fallthrough
CT: control target
= control target key end

     0   :  { %s5681_s0 = inlined_call_operand.vmem [shape: f32[16,32], index: 0, kind: input, shape index: {}]   ;;  %s5682_s1 = inlined_call_operand.vmem [shape: f32[16,48], index: 1, kind: input, shape index: {}]   ;;  %s5683_s2 = inlined_call_operand.vmem [shape: f32[128,16], index: 2, kind: input, shape index: {}]   ;;  %s5684_s3 = inlined_call_operand.vmem [shape: f32[16,32], index: 3, kind: input, shape index: {}]   ;;  %s5685_s4 = inlined_call_operand.vmem [shape: f32[16,16], index: 4, kind: input, shape index: {}]   ;;  %s5686_s5 = inlined_call_operand.vmem [shape: f32[2,16], index: 5, kind: input, shape index: {}]   ;;  %s5687_s6 = inlined_call_operand.vmem [shape: f32[48,32], index: 6, kind: input, shape index: {}]   ;;  %s5688_s7 = inlined_call_operand.vmem [shape: f32[2,16,32], index: 7, kind: input, shape index: {}]   ;;  %s5689_s8 = inlined_call_operand.vmem [shape: f32[3,32,32], index: 8, kind: input, shape index: {}]   ;;  %s5690_s9 = inlined_call_operand.vmem [shape: f32[5,1,32], index: 9, kind: input, shape index: {}]   ;;  %s5691_s10 = inlined_call_operand.vmem [shape: f32[2,32,96], index: 10, kind: input, shape index: {}]   ;;  %s5692_s11 = inlined_call_operand.vmem [shape: f32[2,1,96], index: 11, kind: input, shape index: {}]   ;;  %s5693_s12 = inlined_call_operand.vmem [shape: f32[2,32,32], index: 12, kind: input, shape index: {}]   ;;  %s5694_s13 = inlined_call_operand.vmem [shape: f32[2,6,1,32], index: 13, kind: input, shape index: {}]   ;;  %s5695_s14 = inlined_call_operand.vmem [shape: f32[2,32,64], index: 14, kind: input, shape index: {}]   ;;  %s5696_s15 = inlined_call_operand.vmem [shape: f32[2,1,64], index: 15, kind: input, shape index: {}]   ;;  %s5697_s16 = inlined_call_operand.vmem [shape: f32[2,64,32], index: 16, kind: input, shape index: {}]   ;;  %s5698_s17 = inlined_call_operand.vmem [shape: f32[32,10], index: 17, kind: input, shape index: {}]   ;;  %s5699_s18 = inlined_call_operand.vmem [shape: f32[1,10], index: 18, kind: input, shape index: {}]   ;;  %s5700_s19 = inlined_call_operand.hbm [shape: f32[2,10], index: 19, kind: output, shape index: {}]  }
   0x1   :  { %5711 = sst [smem:[#allocation5_spill]] %s5681_s0 }
   0x2   :  { %5712 = sst [smem:[#allocation6_spill]] %s5682_s1 }
   0x3   :  { %5713 = sst [smem:[#allocation7_spill]] %s5683_s2 }
   0x4   :  { %5714 = sst [smem:[#allocation8_spill]] %s5684_s3 }
   0x5   :  { %v176_v0 = vld [vmem:[%s5688_s7] sm:$0xff]  ;;  %v177_v1 = vld [vmem:[%s5688_s7 + $0x8] sm:$0xff]  ;;  %s5715_s2 = sld [smem:[#allocation7_spill]]  ;;  %vm178_vm0 = vcmask 130048   ;;  %v3742_v4 = vld [vmem:[%s5688_s7 + $0x10] sm:$0xff]  ;;  %vm78_vm1 = vcmask 392192  }
   0x6   :  { %v4438_v3 = vpack.c.bf16 %v177_v1, %v176_v0  ;;  %v3743_v5 = vld [vmem:[%s5688_s7 + $0x18] sm:$0xff]  ;;  %v65_v9 = vld [vmem:[%s5687_s6] sm:$0xff]  ;;  %v66_v10 = vld [vmem:[%s5687_s6 + $0x8] sm:$0xff]  ;;  %s5716_s29 = sld [smem:[#allocation6_spill]] }
   0x7   :  { %v4442_v6 = vpack.c.bf16 %v3743_v5, %v3742_v4  ;;  %v67_v11 = vld [vmem:[%s5687_s6 + $0x10] sm:$0xff]  ;;  %v68_v12 = vld [vmem:[%s5687_s6 + $0x18] sm:$0xff]  ;;  %v4426_v15 = vpack.c.bf16 %v66_v10, %v65_v9  ;;  %v69_v18 = vld [vmem:[%s5687_s6 + $0x20] sm:$0xff] }
   0x8   :  { %4439 = vmatprep.subr.bf16.mxu1 %v4438_v3  ;;  %v4430_v16 = vpack.c.bf16 %v68_v12, %v67_v11  ;;  %v70_v19 = vld [vmem:[%s5687_s6 + $0x28] sm:$0xff] }
   0x9   :  { %4441 = vmatpush3.bf16.msra.mxu1 %v4438_v3 }
   0xa   :  { %4443 = vmatprep.subr.bf16.mxu1 %v4442_v6 }
   0xb   :  { %v160_v2 = vld [vmem:[%s5715_s2] sm:$0xff]  ;;  %v161_v7 = vld [vmem:[%s5715_s2 + $0x8] sm:$0xff]  ;;  %v162_v8 = vld [vmem:[%s5715_s2 + $0x10] sm:$0xff] }
   0xc   :  { %4107 = vmatprep.mubr.msk.f32.mxu1 %vm178_vm0, %v160_v2  ;;  %v163_v13 = vld [vmem:[%s5715_s2 + $0x18] sm:$0xff]  ;;  %v164_v14 = vld [vmem:[%s5715_s2 + $0x20] sm:$0xff] }
   0xd   :  { %4108 = vmatmul.mubr.msk.f32.vlgmr.msra.gmra.mrb[0].mxu1 %vm178_vm0, %v161_v7  ;;  %v63_v17 = vld [vmem:[%s5716_s29] sm:$0xff] }
   0xe   :  { %4445 = vmatpush3.bf16.msra.mxu1 %v4442_v6  ;;  %4110 = vmatprep.mubr.msk.f32.mxu1 %vm178_vm0, %v162_v8 }
   0xf   :  { %4100 = vmatprep.mubr.msk.f32.mxu0 %vm78_vm1, %v63_v17 }
  0x10   :  { %24 = vsyncpa [#allocation3], 0  ;;  %4427 = vmatprep.subr.bf16.mxu0 %v4426_v15  ;;  %v165_v20 = vld [vmem:[%s5715_s2 + $0x28] sm:$0xff]  ;;  %v4434_v21 = vpack.c.bf16 %v70_v19, %v69_v18  ;;  %v166_v22 = vld [vmem:[%s5715_s2 + $0x30] sm:$0xff]  ;;  %vm563_vm2 = vcmask 261120   ;;  %s5717_s28 = sld [smem:[#allocation5_spill]] }
  0x11   :  { %4111 = vmatmul.mubr.msk.f32.gmra.mrb[2].mxu1 %vm178_vm0, %v163_v13  ;;  %4429 = vmatpush3.bf16.msra.mxu0 %v4426_v15  ;;  %v167_v23 = vld [vmem:[%s5715_s2 + $0x38] sm:$0xff]  ;;  %v168_v24 = vld [vmem:[%s5715_s2 + $0x40] sm:$0xff]  ;;  %v64_v25 = vld [vmem:[%s5716_s29 + $0x8] sm:$0xff]  ;;  %s5718_s27 = sld [smem:[#allocation8_spill]]  ;;  %vm975_vm3 = vcmask 64512   ;;  %s4874_s26 = smov 88  }
  0x12   :  { %4113 = vmatprep.mubr.msk.f32.mxu1 %vm178_vm0, %v164_v14  ;;  %4431 = vmatprep.subr.bf16.mxu0 %v4430_v16  ;;  %v169_v26 = vld [vmem:[%s5715_s2 + $0x48] sm:$0xff]  ;;  %v170_v27 = vld [vmem:[%s5715_s2 + $0x50] sm:$0xff]  ;;  %v171_v28 = vld [vmem:[%s5715_s2 + $0x58] sm:$0xff]  ;;  %s4877_s0 = smov 120   ;;  %s4878_s30 = smov 112   ;;  %vm1812_vm5 = vcmask 195584  }
  0x13   :  { %v172_v29 = vld [vmem:[%s5715_s2 + $0x60] sm:$0xff]  ;;  %v173_v30 = vld [vmem:[%s5715_s2 + $0x68] sm:$0xff]  ;;  %v174_v31 = vld [vmem:[%s5715_s2 + $0x70] sm:$0xff]  ;;  %s4879_s7 = smov 104   ;;  %s4880_s22 = smov 64   ;;  %vm2081_vm6 = vcmask 523264  }
  0x14   :  { %v175_v32 = vld [vmem:[%s5715_s2 + $0x78] sm:$0xff]  ;;  %v3762_v33 = vld [vmem:[%s5689_s8 + $0x20] sm:$0xff]  ;;  %v3763_v34 = vld [vmem:[%s5689_s8 + $0x28] sm:$0xff]  ;;  %s4881_s23 = smov 56   ;;  %s4882_s6 = smov 48   ;;  %vm4888_vm7 = vmmov 0  }
  0x15   :  { %4114 = vmatmul.mubr.msk.f32.gmra.mrb[4].mxu1 %vm178_vm0, %v165_v20  ;;  %4433 = vmatpush3.bf16.msra.mxu0 %v4430_v16  ;;  %v4446_v35 = vpack.c.bf16 %v3763_v34, %v3762_v33  ;;  %v3764_v36 = vld [vmem:[%s5689_s8 + $0x30] sm:$0xff]  ;;  %v3765_v37 = vld [vmem:[%s5689_s8 + $0x38] sm:$0xff]  ;;  %v554_v39 = vld [vmem:[%s5689_s8] sm:$0xff]  ;;  %s5709_s24 = smov 8   ;;  %s5707_s25 = smov 16   ;;  %vm3707_vm8 = vcmask 74752  }
  0x16   :  { %4116 = vmatprep.mubr.msk.f32.mxu1 %vm178_vm0, %v166_v22  ;;  %4435 = vmatprep.subr.bf16.mxu0 %v4434_v21  ;;  %v4450_v38 = vpack.c.bf16 %v3765_v37, %v3764_v36  ;;  %v555_v40 = vld [vmem:[%s5689_s8 + $0x8] sm:$0xff]  ;;  %v3723_v42 = vld [vmem:[%s5690_s9] ss:$0 sm:$0xff]  ;;  %v556_v44 = vld [vmem:[%s5689_s8 + $0x10] sm:$0xff]  ;;  %s5705_s3 = smov 24   ;;  %s5723_s2 = smov 24  }
  0x17   :  { %v4454_v41 = vpack.c.bf16 %v555_v40, %v554_v39  ;;  %v557_v45 = vld [vmem:[%s5689_s8 + $0x18] sm:$0xff]  ;;  %v552_v50 = vld [vmem:[%s5717_s28] sm:$0xff]  ;;  %v3771_v52 = vld [vmem:[%s5689_s8 + $0x48] sm:$0xff]  ;;  %s4890_s1 = smov [#allocation2]  }
  0x18   :  { %v4458_v49 = vpack.c.bf16 %v557_v45, %v556_v44  ;;  %v3770_v51 = vld [vmem:[%s5689_s8 + $0x40] sm:$0xff]  ;;  %v3772_v54 = vld [vmem:[%s5689_s8 + $0x50] sm:$0xff]  ;;  %v3773_v55 = vld [vmem:[%s5689_s8 + $0x58] sm:$0xff]  ;;  %s4883_s8 = smov 40  }
  0x19   :  { %4117 = vmatmul.mubr.msk.f32.gmra.mrb[6].mxu1 %vm178_vm0, %v167_v23  ;;  %4437 = vmatpush3.bf16.msra.mxu0 %v4434_v21  ;;  %v4462_v53 = vpack.c.bf16 %v3771_v52, %v3770_v51  ;;  %v553_v56 = vld [vmem:[%s5717_s28 + $0x8] sm:$0xff]  ;;  %v4466_v57 = vpack.c.bf16 %v3773_v55, %v3772_v54  ;;  %v879_v51 = vld [vmem:[%s5691_s10 + $0x10] sm:$0xff]  ;;  %v880_v52 = vld [vmem:[%s5691_s10 + $0x18] sm:$0xff]  ;;  %s4876_s28 = smov 72  }
  0x1a   :  { %4119 = vmatprep.mubr.msk.f32.mxu1 %vm178_vm0, %v168_v24  ;;  %4447 = vmatprep.subr.bf16.mxu0 %v4446_v35  ;;  %v825_v33 = vld [vmem:[%s5718_s27 + $0x8] sm:$0xff]  ;;  %vm5225_vm4 = vmpackc.low %vm975_vm3, %vm975_vm3 }
  0x1c   :  { %4101 = vmatmul.mubr.msk.f32.vlgmr.msra.gmra.mrb[0].mxu0 %vm78_vm1, %v64_v25 }
  0x1d   :  { %4120 = vmatmul.mubr.msk.f32.gmra.mrb[8].mxu1 %vm178_vm0, %v169_v26  ;;  %4449 = vmatpush3.bf16.msra.mxu0 %v4446_v35 }
  0x1e   :  { %4122 = vmatprep.mubr.msk.f32.mxu1 %vm178_vm0, %v170_v27  ;;  %4451 = vmatprep.subr.bf16.mxu0 %v4450_v38 }
  0x21   :  { %4123 = vmatmul.mubr.msk.f32.gmra.mrb[10].mxu1 %vm178_vm0, %v171_v28  ;;  %4453 = vmatpush3.bf16.msra.mxu0 %v4450_v38 }
  0x22   :  { %4125 = vmatprep.mubr.msk.f32.mxu1 %vm178_vm0, %v172_v29  ;;  %4455 = vmatprep.subr.bf16.mxu0 %v4454_v41 }
  0x25   :  { %4126 = vmatmul.mubr.msk.f32.gmra.mrb[12].mxu1 %vm178_vm0, %v173_v30 }
  0x26   :  { %4128 = vmatprep.mubr.msk.f32.mxu1 %vm178_vm0, %v174_v31 }
  0x29   :  { %4129 = vmatmul.mubr.msk.f32.gmra.mrb[14].mxu1 %vm178_vm0, %v175_v32 }
  0x2a   :  { %4135 = vmatprep.mubr.msk.f32.mxu1 %vm178_vm0, %v160_v2 }
  0x2d   :  { %4136 = vmatmul.mubr.msk.f32.vlgmr.msra.gmra.mrb[16].mxu1 %vm178_vm0, %v161_v7 }
  0x2e   :  { %4138 = vmatprep.mubr.msk.f32.mxu1 %vm178_vm0, %v162_v8 }
  0x31   :  { %4139 = vmatmul.mubr.msk.f32.gmra.mrb[0].mxu1 %vm178_vm0, %v163_v13 }
  0x32   :  { %4141 = vmatprep.mubr.msk.f32.mxu1 %vm178_vm0, %v164_v14 }
  0x35   :  { %4142 = vmatmul.mubr.msk.f32.gmra.mrb[2].mxu1 %vm178_vm0, %v165_v20 }
  0x36   :  { %4144 = vmatprep.mubr.msk.f32.mxu1 %vm178_vm0, %v166_v22  ;;  %v3761_v22 = vld [vmem:[%s5690_s9 + $0x1] ss:$0 sm:$0xff] }
  0x39   :  { %4145 = vmatmul.mubr.msk.f32.gmra.mrb[4].mxu1 %vm178_vm0, %v167_v23 }
  0x3a   :  { %4147 = vmatprep.mubr.msk.f32.mxu1 %vm178_vm0, %v168_v24 }
  0x3d   :  { %4148 = vmatmul.mubr.msk.f32.gmra.mrb[6].mxu1 %vm178_vm0, %v169_v26 }
  0x3e   :  { %4150 = vmatprep.mubr.msk.f32.mxu1 %vm178_vm0, %v170_v27  ;;  %v3777_v27 = vld [vmem:[%s5690_s9 + $0x2] ss:$0 sm:$0xff] }
  0x41   :  { %4151 = vmatmul.mubr.msk.f32.gmra.mrb[8].mxu1 %vm178_vm0, %v171_v28 }
  0x42   :  { %4153 = vmatprep.mubr.msk.f32.mxu1 %vm178_vm0, %v172_v29 }
  0x45   :  { %4154 = vmatmul.mubr.msk.f32.gmra.mrb[10].mxu1 %vm178_vm0, %v173_v30  ;;  %v824_v30 = vld [vmem:[%s5718_s27] sm:$0xff]  ;;  %s4875_s27 = smov 80  }
  0x46   :  { %4156 = vmatprep.mubr.msk.f32.mxu1 %vm178_vm0, %v174_v31 }
  0x49   :  { %4157 = vmatmul.mubr.msk.f32.gmra.mrb[12].mxu1 %vm178_vm0, %v175_v32 }
  0xef   :  { %v4102_v43 = vpop.f32.mrb[0].mxu0 }
  0xf0   :  { %v157_v46 = vadd.f32 %v4102_v43, %v3723_v42  ;;  %v151_v47 = vpop.f32.mrb[1].mxu0 }
  0xf1   :  { %v152_v48 = vadd.f32 %v3723_v42, %v151_v47 }
  0xf3   :  { %4167 = vmatprep.mubr.msk.f32.mxu0 %vm563_vm2, %v152_v48  ;;  %v877_v48 = vld [vmem:[%s5691_s10] sm:$0xff] }
  0xf4   :  { %4168 = vmatmul.mubr.msk.f32.vlgmr.msra.gmra.mrb[2].mxu0 %vm563_vm2, %v157_v46 }
  0xf5   :  { %4457 = vmatpush3.bf16.msra.mxu0 %v4454_v41  ;;  %4178 = vmatprep.mubr.msk.f32.mxu0 %vm563_vm2, %v552_v50 }
  0xf6   :  { %4459 = vmatprep.subr.bf16.mxu0 %v4458_v49 }
  0xf9   :  { %4461 = vmatpush3.bf16.msra.mxu0 %v4458_v49  ;;  %v878_v49 = vld [vmem:[%s5691_s10 + $0x8] sm:$0xff] }
  0xfa   :  { %4463 = vmatprep.subr.bf16.mxu0 %v4462_v53  ;;  %v4470_v50 = vpack.c.bf16 %v878_v49, %v877_v48 }
  0xfc   :  { %v4130_v58 = vpop.f32.mrb[14].mxu1  ;;  %4179 = vmatmul.mubr.msk.f32.vlgmr.msra.gmra.mrb[2].mxu0 %vm563_vm2, %v553_v56 }
  0xfd   :  { %v363_v59 = vpop.f32.mrb[15].mxu1  ;;  %4465 = vmatpush3.bf16.msra.mxu0 %v4462_v53  ;;  %v4474_v53 = vpack.c.bf16 %v880_v52, %v879_v51 }
  0xfe   :  { %4467 = vmatprep.subr.bf16.mxu0 %v4466_v57 }
 0x100   :  { %v4137_v60 = vpop.f32.mrb[16].mxu1 }
 0x101   :  { %v439_v61 = vpop.f32.mrb[17].mxu1  ;;  %4469 = vmatpush3.bf16.msra.mxu0 %v4466_v57 }
 0x102   :  { %4471 = vmatprep.subr.bf16.mxu0 %v4470_v50  ;;  %v3780_v61 = vld [vmem:[%s5690_s9 + $0x3] ss:$0 sm:$0xff] }
 0x104   :  { %v4140_v62 = vpop.f32.mrb[0].mxu1 }
 0x105   :  { %v447_v63 = vpop.f32.mrb[1].mxu1 }
 0x108   :  { %v4143_v0 = vpop.f32.mrb[2].mxu1 }
 0x109   :  { %v521_v1 = vmax.f32 %v4140_v62, %v4143_v0  ;;  %v457_v2 = vpop.f32.mrb[3].mxu1 }
 0x10a   :  { %v520_v3 = vmax.f32 %v447_v63, %v457_v2  ;;  %v3781_v63 = vld [vmem:[%s5690_s9 + $0x4] ss:$0 sm:$0xff]  ;;  %s4873_s9 = smov 96  }
 0x10c   :  { %v4146_v4 = vpop.f32.mrb[4].mxu1 }
 0x10d   :  { %v525_v5 = vmax.f32 %v521_v1, %v4146_v4  ;;  %v467_v6 = vpop.f32.mrb[5].mxu1 }
 0x10e   :  { %v524_v7 = vmax.f32 %v520_v3, %v467_v6  ;;  %v3782_v6 = vld [vmem:[%s5692_s11] ss:$0 sm:$0xff] }
 0x110   :  { %v4149_v8 = vpop.f32.mrb[6].mxu1 }
 0x111   :  { %v529_v9 = vmax.f32 %v525_v5, %v4149_v8  ;;  %v477_v10 = vpop.f32.mrb[7].mxu1 }
 0x112   :  { %v528_v11 = vmax.f32 %v524_v7, %v477_v10 }
 0x114   :  { %v4152_v12 = vpop.f32.mrb[8].mxu1 }
 0x115   :  { %v533_v13 = vmax.f32 %v529_v9, %v4152_v12  ;;  %v487_v14 = vpop.f32.mrb[9].mxu1 }
 0x116   :  { %v532_v15 = vmax.f32 %v528_v11, %v487_v14 }
 0x118   :  { %v4155_v16 = vpop.f32.mrb[10].mxu1 }
 0x119   :  { %v537_v17 = vmax.f32 %v533_v13, %v4155_v16  ;;  %v497_v18 = vpop.f32.mrb[11].mxu1 }
 0x11a   :  { %v536_v19 = vmax.f32 %v532_v15, %v497_v18 }
 0x11c   :  { %v4158_v20 = vpop.f32.mrb[12].mxu1 }
 0x11d   :  { %v541_v21 = vmax.f32 %v537_v17, %v4158_v20  ;;  %v507_v23 = vpop.f32.mrb[13].mxu1 }
 0x11e   :  { %v540_v24 = vmax.f32 %v536_v19, %v507_v23 }
 0x11f   :  { %v551_v26 = vadd.f32 %v3761_v22, %v541_v21 }
 0x120   :  { %v550_v25 = vadd.f32 %v3761_v22, %v540_v24 }
 0x122   :  { %4189 = vmatprep.mubr.msk.f32.mxu0 %vm563_vm2, %v550_v25 }
 0x123   :  { %4190 = vmatmul.mubr.msk.f32.vlgmr.msra.gmra.mrb[2].mxu0 %vm563_vm2, %v551_v26 }
 0x124   :  { %4473 = vmatpush3.bf16.msra.mxu0 %v4470_v50 }
 0x125   :  { %4475 = vmatprep.subr.bf16.mxu0 %v4474_v53 }
 0x128   :  { %4477 = vmatpush3.bf16.msra.mxu0 %v4474_v53 }
 0x1f6   :  { %v4191_v28 = vpop.f32.mrb[2].mxu0 }
 0x1f7   :  { %v803_v29 = vpop.f32.mrb[3].mxu0  ;;  %v823_v31 = vadd.f32 %v4191_v28, %v3777_v27  ;;  %v5243_v28 = vld [vmem:[%s5685_s4] sm:$0xff] }
 0x1f8   :  { %v822_v32 = vadd.f32 %v3777_v27, %v803_v29 }
 0x1f9   :  { %v827_v36 = vadd.f32 %v825_v33, %v823_v31  ;;  %v5248_v31 = vld [vmem:[%s5685_s4 + $0x8] sm:$0xff] }
 0x1fa   :  { %v826_v34 = vadd.f32 %v824_v30, %v822_v32 }
 0x1fb   :  { %v835_v37 = vsel %vm563_vm2, %v827_v36, 0.0 }
 0x1fc   :  { %v832_v35 = vsel %vm563_vm2, %v826_v34, 0.0 }
 0x1fd   :  { %833 = vadd.xlane.f32.xlu0 %v832_v35 }
 0x201   :  { %836 = vadd.xlane.f32.xlu0 %v835_v37 }
 0x28a   :  { %v834_v38 = vpop.xlane.xlu0 %833 }
 0x28b   :  { %v839_v39 = vmul.f32 0.03125, %v834_v38 }
 0x28d   :  { %v841_v40 = vsub.f32 %v826_v34, %v839_v39 }
 0x28e   :  { %v837_v41 = vpop.xlane.xlu0 %836 }
 0x28f   :  { %v840_v42 = vmul.f32 0.03125, %v837_v41  ;;  %v843_v43 = vmul.f32 %v841_v40, %v841_v40 }
 0x291   :  { %v842_v44 = vsub.f32 %v827_v36, %v840_v42  ;;  %v845_v45 = vsel %vm563_vm2, %v843_v43, 0.0 }
 0x292   :  { %846 = vadd.xlane.f32.xlu1 %v845_v45 }
 0x293   :  { %v844_v46 = vmul.f32 %v842_v44, %v842_v44 }
 0x295   :  { %v848_v47 = vsel %vm563_vm2, %v844_v46, 0.0 }
 0x296   :  { %849 = vadd.xlane.f32.xlu1 %v848_v47 }
 0x31f   :  { %v847_v54 = vpop.xlane.xlu1 %846 }
 0x320   :  { %v851_v55 = vmul.f32 0.03125, %v847_v54 }
 0x322   :  { %v853_v56 = vadd.f32 1e-12, %v851_v55 }
 0x323   :  { %v850_v57 = vpop.xlane.xlu1 %849 }
 0x324   :  { %4755 = vrsqrt.f32 %v853_v56  ;;  %v852_v58 = vmul.f32 0.03125, %v850_v57 }
 0x326   :  { %v854_v59 = vadd.f32 1e-12, %v852_v58 }
 0x328   :  { %4757 = vrsqrt.f32 %v854_v59 }
 0x32e   :  { %v4756_v60 = vpop.eup %4755 }
 0x32f   :  { %v857_v62 = vmul.f32 %v4756_v60, %v841_v40 }
 0x331   :  { %v865_v0 = vmul.f32 %v3780_v61, %v857_v62 }
 0x332   :  { %v4758_v1 = vpop.eup %4757 }
 0x333   :  { %v858_v2 = vmul.f32 %v4758_v1, %v842_v44  ;;  %v5194_v3 = vadd.f32 %v3781_v63, %v865_v0 }
 0x335   :  { %v866_v4 = vmul.f32 %v3780_v61, %v858_v2  ;;  %4200 = vmatprep.mubr.msk.f32.mxu0 %vm563_vm2, %v5194_v3 }
 0x337   :  { %v5198_v5 = vadd.f32 %v3781_v63, %v866_v4 }
 0x339   :  { %4201 = vmatmul.mubr.msk.f32.vlgmr.msra.gmra.mrb[4].mxu0 %vm563_vm2, %v5198_v5 }
 0x40c   :  { %v4202_v7 = vpop.f32.mrb[4].mxu0 }
 0x40d   :  { %v966_v8 = vadd.f32 %v4202_v7, %v3782_v6  ;;  %v960_v9 = vpop.f32.mrb[5].mxu0 }
 0x40e   :  { %v5205_v10 = vadd.f32 %v3782_v6, %v960_v9 }
 0x410   :  { %4207 = vmatprep.mubr.msk.f32.mxu0 %vm975_vm3, %v5205_v10  ;;  %v5210_v11 = vpack.i.bf16 %v966_v8, %v5205_v10 }
 0x412   :  { %4676 = vrot.lane.b32.xlu0 %v5210_v11, %s4873_s9 }
 0x416   :  { %4686 = vrot.lane.b32.xlu0 %v5210_v11, %s4874_s26 }
 0x41a   :  { %4691 = vrot.lane.b32.xlu0 %v5210_v11, %s4875_s27 }
 0x41e   :  { %4696 = vrot.lane.b32.xlu0 %v5210_v11, %s4876_s28 }
 0x422   :  { %1174 = vrot.lane.b32.xlu0 %v966_v8, %s4877_s0 }
 0x426   :  { %1378 = vrot.lane.b32.xlu0 %v966_v8, %s4878_s30 }
 0x42a   :  { %1582 = vrot.lane.b32.xlu0 %v966_v8, %s4879_s7 }
 0x484   :  { %v4677_v12 = vpop.permute.xlu0 %4676 }
 0x485   :  { %v4679_v13 = vunpack.i.h.bf16 %v4677_v12  ;;  %v4678_v14 = vunpack.i.l.bf16 %v4677_v12 }
 0x487   :  { %v4478_v16 = vpack.c.bf16 %v4679_v13, %v4678_v14 }
 0x488   :  { %v4687_v17 = vpop.permute.xlu0 %4686 }
 0x489   :  { %4480 = vmatprep.subr.msk.bf16.mxu0 %vm5225_vm4, %v4478_v16  ;;  %v4689_v42 = vunpack.i.h.bf16 %v4687_v17  ;;  %v4688_v44 = vunpack.i.l.bf16 %v4687_v17 }
 0x48a   :  { %4483 = vmatpush3.bf16.xpose.msk.msra.mxu0 %vm5225_vm4, %v4478_v16 }
 0x48b   :  { %v4488_v48 = vpack.c.bf16 %v4689_v42, %v4688_v44 }
 0x48c   :  { %v4692_v18 = vpop.permute.xlu0 %4691 }
 0x48d   :  { %v4694_v19 = vunpack.i.h.bf16 %v4692_v18  ;;  %v4693_v20 = vunpack.i.l.bf16 %v4692_v18 }
 0x48f   :  { %v4498_v21 = vpack.c.bf16 %v4694_v19, %v4693_v20 }
 0x490   :  { %v4697_v22 = vpop.permute.xlu0 %4696 }
 0x491   :  { %v4699_v23 = vunpack.i.h.bf16 %v4697_v22  ;;  %v4698_v24 = vunpack.i.l.bf16 %v4697_v22  ;;  %4208 = vmatmul.mubr.msk.f32.vlgmr.msra.gmra.mrb[6].mxu0 %vm975_vm3, %v966_v8  ;;  %4500 = vmatprep.subr.msk.bf16.mxu1 %vm5225_vm4, %v4498_v21 }
 0x492   :  { %4503 = vmatpush3.bf16.xpose.msk.msra.mxu1 %vm5225_vm4, %v4498_v21 }
 0x493   :  { %v4508_v25 = vpack.c.bf16 %v4699_v23, %v4698_v24 }
 0x494   :  { %v1175_v55 = vpop.permute.xlu0 %1174 }
 0x495   :  { %4510 = vmatprep.subr.msk.bf16.mxu1 %vm5225_vm4, %v4508_v25 }
 0x498   :  { %v1379_v58 = vpop.permute.xlu0 %1378 }
 0x49c   :  { %v1583_v63 = vpop.permute.xlu0 %1582 }
 0x564   :  { %v4209_v26 = vpop.f32.mrb[6].mxu0 }
 0x565   :  { %v1050_v27 = vpop.f32.mrb[7].mxu0  ;;  %v1060_v29 = vmul.f32 0.35355338, %v4209_v26 }
 0x566   :  { %v1059_v30 = vmul.f32 0.35355338, %v1050_v27 }
 0x567   :  { %v1062_v34 = vadd.f32 %v1060_v29, %v5248_v31 }
 0x568   :  { %v1061_v32 = vadd.f32 %v1059_v30, %v5243_v28 }
 0x569   :  { %v1066_v35 = vsel %vm178_vm0, %v1062_v34, -inf }
 0x56a   :  { %v1063_v33 = vsel %vm178_vm0, %v1061_v32, -inf }
 0x56b   :  { %1064 = vmax.xlane.f32.xlu1 %v1063_v33 }
 0x56f   :  { %1067 = vmax.xlane.f32.xlu1 %v1066_v35 }
 0x580   :  { %4681 = vrot.lane.b32.xlu1 %v5210_v11, %s4880_s22 }
 0x584   :  { %1172 = vrot.lane.b32.xlu1 %v5205_v10, %s4877_s0 }
 0x5f8   :  { %v1065_v36 = vpop.xlane.xlu1 %1064 }
 0x5f9   :  { %v1069_v37 = vsub.f32 %v1061_v32, %v1065_v36 }
 0x5fb   :  { %v1071_v40 = vmul.f32 1.442695, %v1069_v37 }
 0x5fc   :  { %v1068_v38 = vpop.xlane.xlu1 %1067 }
 0x5fd   :  { %v1070_v39 = vsub.f32 %v1062_v34, %v1068_v38 }
 0x5ff   :  { %v1073_v41 = vmul.f32 1.442695, %v1070_v39 }
 0x600   :  { %v4682_v43 = vpop.permute.xlu1 %4681 }
 0x601   :  { %4759 = vpow2.f32 %v1073_v41  ;;  %v4684_v45 = vunpack.i.h.bf16 %v4682_v43  ;;  %v4683_v46 = vunpack.i.l.bf16 %v4682_v43 }
 0x602   :  { %4761 = vpow2.f32 %v1071_v40 }
 0x603   :  { %v4484_v47 = vpack.c.bf16 %v4684_v45, %v4683_v46 }
 0x604   :  { %v1173_v53 = vpop.permute.xlu1 %1172 }
 0x605   :  { %4485 = vmatprep.subr.bf16.mxu0 %v4484_v47 }
 0x606   :  { %4487 = vmatpush3.bf16.msra.mxu0 %v4484_v47 }
 0x607   :  { %4490 = vmatprep.subr.msk.bf16.mxu0 %vm5225_vm4, %v4488_v48 }
 0x60b   :  { %v4760_v49 = vpop.eup %4759 }
 0x60c   :  { %v1078_v50 = vsel %vm178_vm0, %v4760_v49, 0.0  ;;  %v4762_v51 = vpop.eup %4761 }
 0x60d   :  { %1079 = vadd.xlane.f32.xlu1 %v1078_v50  ;;  %v1075_v52 = vsel %vm178_vm0, %v4762_v51, 0.0 }
 0x611   :  { %1076 = vadd.xlane.f32.xlu1 %v1075_v52 }
 0x622   :  { %1376 = vrot.lane.b32.xlu1 %v5205_v10, %s4878_s30 }
 0x626   :  { %1580 = vrot.lane.b32.xlu1 %v5205_v10, %s4879_s7 }
 0x69a   :  { %v1080_v54 = vpop.xlane.xlu1 %1079 }
 0x69b   :  { %4763 = vrcp.f32 %v1080_v54 }
 0x69e   :  { %v1077_v56 = vpop.xlane.xlu1 %1076 }
 0x69f   :  { %4765 = vrcp.f32 %v1077_v56 }
 0x6a2   :  { %v1377_v57 = vpop.permute.xlu1 %1376 }
 0x6a3   :  { %4235 = vmatprep.mubr.msk.f32.mxu1 %vm975_vm3, %v1377_v57 }
 0x6a4   :  { %4236 = vmatmul.mubr.msk.f32.vlgmr.msra.gmra.mrb[18].mxu1 %vm975_vm3, %v1379_v58 }
 0x6a5   :  { %4513 = vmatpush3.bf16.xpose.msk.msra.mxu1 %vm5225_vm4, %v4508_v25  ;;  %v4764_v60 = vpop.eup %4763 }
 0x6a6   :  { %v1581_v59 = vpop.permute.xlu1 %1580  ;;  %v1084_v0 = vmul.f32 %v4764_v60, %v4760_v49 }
 0x6a7   :  { %4249 = vmatprep.mubr.msk.f32.mxu1 %vm975_vm3, %v1581_v59 }
 0x6a9   :  { %v4766_v61 = vpop.eup %4765 }
 0x6aa   :  { %v1082_v62 = vmul.f32 %v4766_v61, %v4762_v51 }
 0x6ac   :  { %4250 = vmatmul.mubr.msk.f32.vlgmr.msra.gmra.mrb[20].mxu1 %vm975_vm3, %v1583_v63  ;;  %4214 = vmatprep.mubr.msk.f32.mxu0 %vm178_vm0, %v1082_v62 }
 0x6ad   :  { %4215 = vmatmul.mubr.msk.f32.vlgmr.msra.gmra.mrb[8].mxu0 %vm178_vm0, %v1084_v0 }
 0x6ae   :  { %4493 = vmatpush3.bf16.xpose.msk.msra.mxu0 %vm5225_vm4, %v4488_v48  ;;  %4221 = vmatprep.mubr.msk.f32.mxu0 %vm975_vm3, %v1173_v53 }
 0x6b5   :  { %4222 = vmatmul.mubr.msk.f32.vlgmr.msra.gmra.mrb[10].mxu0 %vm975_vm3, %v1175_v55 }
 0x777   :  { %v4237_v1 = vpop.f32.mrb[18].mxu1 }
 0x778   :  { %v1458_v2 = vpop.f32.mrb[19].mxu1  ;;  %v1468_v19 = vmul.f32 0.35355338, %v4237_v1 }
 0x779   :  { %v1467_v10 = vmul.f32 0.35355338, %v1458_v2 }
 0x77a   :  { %v1470_v26 = vadd.f32 %v1468_v19, %v5248_v31 }
 0x77b   :  { %v1469_v21 = vadd.f32 %v1467_v10, %v5243_v28 }
 0x77c   :  { %v1474_v29 = vsel %vm178_vm0, %v1470_v26, -inf }
 0x77d   :  { %v1471_v25 = vsel %vm178_vm0, %v1469_v21, -inf }
 0x77f   :  { %v4251_v4 = vpop.f32.mrb[20].mxu1 }
 0x780   :  { %v1662_v6 = vpop.f32.mrb[21].mxu1  ;;  %v5278_v7 = vpop.f32.mrb[8].mxu0  ;;  %v1672_v24 = vmul.f32 0.35355338, %v4251_v4 }
 0x781   :  { %v5280_v8 = vpop.f32.mrb[9].mxu0  ;;  %v1671_v14 = vmul.f32 0.35355338, %v1662_v6 }
 0x782   :  { %v1674_v30 = vadd.f32 %v1672_v24, %v5248_v31 }
 0x783   :  { %v1673_v23 = vadd.f32 %v1671_v14, %v5243_v28 }
 0x784   :  { %v1678_v32 = vsel %vm178_vm0, %v1674_v30, -inf }
 0x785   :  { %v1675_v27 = vsel %vm178_vm0, %v1673_v23, -inf }
 0x788   :  { %v4223_v9 = vpop.f32.mrb[10].mxu0 }
 0x789   :  { %v1264_v12 = vmul.f32 0.35355338, %v4223_v9  ;;  %v1254_v13 = vpop.f32.mrb[11].mxu0 }
 0x78a   :  { %v1263_v16 = vmul.f32 0.35355338, %v1254_v13 }
 0x78b   :  { %v1266_v17 = vadd.f32 %v1264_v12, %v5248_v31 }
 0x78c   :  { %v1265_v18 = vadd.f32 %v1263_v16, %v5243_v28 }
 0x78d   :  { %v1270_v20 = vsel %vm178_vm0, %v1266_v17, -inf }
 0x78e   :  { %1271 = vmax.xlane.f32.xlu0 %v1270_v20  ;;  %v1267_v22 = vsel %vm178_vm0, %v1265_v18, -inf }
 0x78f   :  { %1268 = vmax.xlane.f32.xlu1 %v1267_v22 }
 0x792   :  { %1472 = vmax.xlane.f32.xlu0 %v1471_v25 }
 0x793   :  { %1676 = vmax.xlane.f32.xlu1 %v1675_v27 }
 0x796   :  { %1475 = vmax.xlane.f32.xlu0 %v1474_v29 }
 0x79a   :  { %1679 = vmax.xlane.f32.xlu0 %v1678_v32 }
 0x81b   :  { %v1272_v33 = vpop.xlane.xlu0 %1271 }
 0x81c   :  { %v1269_v34 = vpop.xlane.xlu1 %1268  ;;  %v1274_v43 = vsub.f32 %v1266_v17, %v1272_v33 }
 0x81d   :  { %v1273_v59 = vsub.f32 %v1265_v18, %v1269_v34 }
 0x81e   :  { %v1277_v47 = vmul.f32 1.442695, %v1274_v43 }
 0x81f   :  { %v1473_v35 = vpop.xlane.xlu0 %1472  ;;  %v1275_v60 = vmul.f32 1.442695, %v1273_v59 }
 0x820   :  { %v1477_v36 = vsub.f32 %v1469_v21, %v1473_v35  ;;  %v1677_v37 = vpop.xlane.xlu1 %1676 }
 0x821   :  { %v1681_v38 = vsub.f32 %v1673_v23, %v1677_v37  ;;  %v1816_v37 = vld [vmem:[%s5693_s12 + $0x8] sm:$0xff] }
 0x822   :  { %v1479_v39 = vmul.f32 1.442695, %v1477_v36  ;;  %v1815_v36 = vld [vmem:[%s5693_s12] sm:$0xff] }
 0x823   :  { %v1683_v40 = vmul.f32 1.442695, %v1681_v38  ;;  %v1476_v41 = vpop.xlane.xlu0 %1475  ;;  %v4518_v38 = vpack.c.bf16 %v1816_v37, %v1815_v36 }
 0x824   :  { %4767 = vpow2.f32 %v1479_v39  ;;  %v1478_v42 = vsub.f32 %v1470_v26, %v1476_v41  ;;  %v1817_v39 = vld [vmem:[%s5693_s12 + $0x10] sm:$0xff] }
 0x825   :  { %4769 = vpow2.f32 %v1683_v40  ;;  %v1818_v40 = vld [vmem:[%s5693_s12 + $0x18] sm:$0xff] }
 0x826   :  { %v1481_v44 = vmul.f32 1.442695, %v1478_v42  ;;  %v4522_v41 = vpack.c.bf16 %v1818_v40, %v1817_v39  ;;  %v2065_v40 = vld [vmem:[%s5697_s16] sm:$0xff] }
 0x827   :  { %v1680_v45 = vpop.xlane.xlu0 %1679 }
 0x828   :  { %4771 = vpow2.f32 %v1481_v44  ;;  %v1682_v46 = vsub.f32 %v1674_v30, %v1680_v45 }
 0x82a   :  { %v1685_v48 = vmul.f32 1.442695, %v1682_v46 }
 0x82c   :  { %4773 = vpow2.f32 %v1685_v48 }
 0x82d   :  { %4775 = vpow2.f32 %v1277_v47 }
 0x82e   :  { %v4768_v49 = vpop.eup %4767  ;;  %4777 = vpow2.f32 %v1275_v60 }
 0x82f   :  { %v1483_v50 = vsel %vm178_vm0, %v4768_v49, 0.0  ;;  %v5295_v51 = vpop.eup %4769 }
 0x830   :  { %1484 = vadd.xlane.f32.xlu1 %v1483_v50  ;;  %v1687_v54 = vsel %vm178_vm0, %v5295_v51, 0.0 }
 0x832   :  { %v4772_v52 = vpop.eup %4771 }
 0x833   :  { %v1486_v53 = vsel %vm178_vm0, %v4772_v52, 0.0 }
 0x834   :  { %1487 = vadd.xlane.f32.xlu0 %v1486_v53  ;;  %1688 = vadd.xlane.f32.xlu1 %v1687_v54 }
 0x836   :  { %v5300_v55 = vpop.eup %4773 }
 0x837   :  { %v1690_v56 = vsel %vm178_vm0, %v5300_v55, 0.0  ;;  %v4776_v57 = vpop.eup %4775 }
 0x838   :  { %1691 = vadd.xlane.f32.xlu0 %v1690_v56  ;;  %v1282_v58 = vsel %vm178_vm0, %v4776_v57, 0.0  ;;  %v4778_v61 = vpop.eup %4777 }
 0x839   :  { %v1279_v62 = vsel %vm178_vm0, %v4778_v61, 0.0 }
 0x83c   :  { %1283 = vadd.xlane.f32.xlu0 %v1282_v58 }
 0x845   :  { %4701 = vrot.lane.b32.xlu1 %v5210_v11, %s4881_s23 }
 0x852   :  { %4706 = vrot.lane.b32.xlu0 %v5210_v11, %s4882_s6 }
 0x869   :  { %1280 = vadd.xlane.f32.xlu1 %v1279_v62 }
 0x87a   :  { %4711 = vrot.lane.b32.xlu1 %v5210_v11, %s4883_s8 }
 0x8bd   :  { %v1485_v63 = vpop.xlane.xlu1 %1484 }
 0x8be   :  { %4779 = vrcp.f32 %v1485_v63 }
 0x8c1   :  { %v1488_v0 = vpop.xlane.xlu0 %1487  ;;  %v1689_v1 = vpop.xlane.xlu1 %1688 }
 0x8c5   :  { %v1692_v2 = vpop.xlane.xlu0 %1691  ;;  %v4702_v4 = vpop.permute.xlu1 %4701 }
 0x8c6   :  { %v4704_v6 = vunpack.i.h.bf16 %v4702_v4  ;;  %v4703_v9 = vunpack.i.l.bf16 %v4702_v4 }
 0x8c8   :  { %v4494_v10 = vpack.c.bf16 %v4704_v6, %v4703_v9  ;;  %v4780_v19 = vpop.eup %4779 }
 0x8c9   :  { %v1284_v12 = vpop.xlane.xlu0 %1283  ;;  %v1490_v27 = vmul.f32 %v4780_v19, %v4768_v49  ;;  %v1957_v19 = vld [vmem:[%s5695_s14 + $0x10] sm:$0xff] }
 0x8ca   :  { %4495 = vmatprep.subr.bf16.mxu0 %v4494_v10  ;;  %4781 = vrcp.f32 %v1284_v12 }
 0x8cb   :  { %4497 = vmatpush3.bf16.msra.mxu0 %v4494_v10 }
 0x8cd   :  { %v4707_v13 = vpop.permute.xlu0 %4706 }
 0x8ce   :  { %v4709_v14 = vunpack.i.h.bf16 %v4707_v13  ;;  %v4708_v16 = vunpack.i.l.bf16 %v4707_v13 }
 0x8d0   :  { %v4504_v17 = vpack.c.bf16 %v4709_v14, %v4708_v16 }
 0x8d2   :  { %4505 = vmatprep.subr.bf16.mxu0 %v4504_v17 }
 0x8d4   :  { %v4782_v20 = vpop.eup %4781 }
 0x8d5   :  { %v1288_v25 = vmul.f32 %v4782_v20, %v4776_v57  ;;  %v1958_v20 = vld [vmem:[%s5695_s14 + $0x18] sm:$0xff] }
 0x8f6   :  { %v1281_v18 = vpop.xlane.xlu1 %1280 }
 0x8f7   :  { %4783 = vrcp.f32 %v1281_v18  ;;  %v1956_v18 = vld [vmem:[%s5695_s14 + $0x8] sm:$0xff] }
 0x8f8   :  { %4785 = vrcp.f32 %v1488_v0 }
 0x8f9   :  { %4787 = vrcp.f32 %v1689_v1 }
 0x8fa   :  { %4789 = vrcp.f32 %v1692_v2  ;;  %v4712_v11 = vpop.permute.xlu1 %4711 }
 0x8fb   :  { %v4714_v22 = vunpack.i.h.bf16 %v4712_v11  ;;  %v4713_v23 = vunpack.i.l.bf16 %v4712_v11 }
 0x8fd   :  { %v4514_v30 = vpack.c.bf16 %v4714_v22, %v4713_v23 }
 0x901   :  { %v4784_v21 = vpop.eup %4783 }
 0x902   :  { %v1286_v24 = vmul.f32 %v4784_v21, %v4778_v61  ;;  %v4786_v26 = vpop.eup %4785  ;;  %v4530_v21 = vpack.c.bf16 %v1958_v20, %v1957_v19 }
 0x903   :  { %v4788_v29 = vpop.eup %4787  ;;  %v1492_v32 = vmul.f32 %v4786_v26, %v4772_v52 }
 0x904   :  { %4228 = vmatprep.mubr.msk.f32.mxu0 %vm178_vm0, %v1286_v24  ;;  %v4790_v33 = vpop.eup %4789  ;;  %v1694_v34 = vmul.f32 %v4788_v29, %v5295_v51 }
 0x905   :  { %4229 = vmatmul.mubr.msk.f32.vlgmr.msra.gmra.mrb[12].mxu0 %vm178_vm0, %v1288_v25  ;;  %v1696_v35 = vmul.f32 %v4790_v33, %v5300_v55  ;;  %v3815_v33 = vld [vmem:[%s5694_s13 + $0x2] ss:$0 sm:$0xff] }
 0x906   :  { %4507 = vmatpush3.bf16.msra.mxu0 %v4504_v17  ;;  %4242 = vmatprep.mubr.msk.f32.mxu0 %vm178_vm0, %v1490_v27 }
 0x907   :  { %4515 = vmatprep.subr.bf16.mxu0 %v4514_v30 }
 0x909   :  { %4243 = vmatmul.mubr.msk.f32.vlgmr.msra.gmra.mrb[14].mxu0 %vm178_vm0, %v1492_v32 }
 0x90a   :  { %4517 = vmatpush3.bf16.msra.mxu0 %v4514_v30  ;;  %4256 = vmatprep.mubr.msk.f32.mxu0 %vm178_vm0, %v1694_v34  ;;  %v3814_v30 = vld [vmem:[%s5694_s13 + $0x1] ss:$0 sm:$0xff] }
 0x90b   :  { %4519 = vmatprep.subr.bf16.mxu0 %v4518_v38 }
 0x90d   :  { %4257 = vmatmul.mubr.msk.f32.vlgmr.msra.gmra.mrb[16].mxu0 %vm178_vm0, %v1696_v35 }
 0x90e   :  { %4521 = vmatpush3.bf16.msra.mxu0 %v4518_v38 }
 0x90f   :  { %4523 = vmatprep.subr.bf16.mxu0 %v4522_v41 }
 0x912   :  { %4525 = vmatpush3.bf16.msra.mxu0 %v4522_v41  ;;  %v2066_v41 = vld [vmem:[%s5697_s16 + $0x8] sm:$0xff] }
 0x9d8   :  { %v4230_v42 = vpop.f32.mrb[12].mxu0 }
 0x9d9   :  { %1788 = vrot.lane.b32.xlu1 %v4230_v42, %s5709_s24  ;;  %v1367_v43 = vpop.f32.mrb[13].mxu0  ;;  %v4534_v42 = vpack.c.bf16 %v2066_v41, %v2065_v40 }
 0x9db   :  { %4535 = vmatprep.subr.bf16.mxu0 %v4534_v42 }
 0x9dc   :  { %v4244_v44 = vpop.f32.mrb[14].mxu0 }
 0x9dd   :  { %1786 = vrot.lane.b32.xlu1 %v1367_v43, %s5709_s24  ;;  %v1571_v45 = vpop.f32.mrb[15].mxu0  ;;  %v2067_v43 = vld [vmem:[%s5697_s16 + $0x10] sm:$0xff] }
 0x9de   :  { %1794 = vrot.lane.b32.xlu0 %v1571_v45, %s5707_s25 }
 0x9e0   :  { %v4258_v46 = vpop.f32.mrb[16].mxu0 }
 0x9e1   :  { %1796 = vrot.lane.b32.xlu1 %v4244_v44, %s5707_s25  ;;  %v1775_v47 = vpop.f32.mrb[17].mxu0  ;;  %v2068_v44 = vld [vmem:[%s5697_s16 + $0x18] sm:$0xff] }
 0x9e2   :  { %1802 = vrot.lane.b32.xlu0 %v1775_v47, %s5705_s3  ;;  %v4538_v45 = vpack.c.bf16 %v2068_v44, %v2067_v43  ;;  %v2070_v47 = vld [vmem:[%s5697_s16 + $0x28] sm:$0xff] }
 0x9e5   :  { %1804 = vrot.lane.b32.xlu1 %v4258_v46, %s5705_s3  ;;  %v2069_v46 = vld [vmem:[%s5697_s16 + $0x20] sm:$0xff] }
 0xa4b   :  { %v1789_v48 = vpop.permute.xlu1 %1788 }
 0xa4c   :  { %v1809_v56 = vsel %vm975_vm3, %v5278_v7, %v1789_v48  ;;  %v4542_v48 = vpack.c.bf16 %v2070_v47, %v2069_v46  ;;  %v3825_v46 = vld [vmem:[%s5694_s13 + $0x4] ss:$0 sm:$0xff] }
 0xa4f   :  { %v1787_v49 = vpop.permute.xlu1 %1786 }
 0xa50   :  { %v1795_v50 = vpop.permute.xlu0 %1794  ;;  %v1808_v51 = vsel %vm975_vm3, %v5280_v8, %v1787_v49  ;;  %v3809_v8 = vld [vmem:[%s5694_s13] ss:$0 sm:$0xff]  ;;  %v2071_v49 = vld [vmem:[%s5697_s16 + $0x30] sm:$0xff] }
 0xa51   :  { %v1810_v53 = vsel %vm178_vm0, %v1808_v51, %v1795_v50  ;;  %v2072_v50 = vld [vmem:[%s5697_s16 + $0x38] sm:$0xff] }
 0xa52   :  { %v4546_v51 = vpack.c.bf16 %v2072_v50, %v2071_v49  ;;  %v3826_v50 = vld [vmem:[%s5694_s13 + $0x5] ss:$0 sm:$0xff] }
 0xa53   :  { %v1797_v52 = vpop.permute.xlu1 %1796 }
 0xa54   :  { %v1803_v54 = vpop.permute.xlu0 %1802  ;;  %v1811_v57 = vsel %vm178_vm0, %v1809_v56, %v1797_v52  ;;  %v3816_v52 = vld [vmem:[%s5696_s15] ss:$0 sm:$0xff] }
 0xa55   :  { %v1813_v55 = vsel %vm1812_vm5, %v1810_v53, %v1803_v54 }
 0xa56   :  { %4267 = vmatprep.mubr.msk.f32.mxu0 %vm563_vm2, %v1813_v55 }
 0xa57   :  { %v1805_v58 = vpop.permute.xlu1 %1804 }
 0xa58   :  { %v1814_v59 = vsel %vm1812_vm5, %v1811_v57, %v1805_v58 }
 0xa59   :  { %4268 = vmatmul.mubr.msk.f32.vlgmr.msra.gmra.mrb[18].mxu0 %vm563_vm2, %v1814_v59 }
 0xa5a   :  { %4537 = vmatpush3.bf16.msra.mxu0 %v4534_v42 }
 0xa5b   :  { %4539 = vmatprep.subr.bf16.mxu0 %v4538_v45 }
 0xa5e   :  { %4541 = vmatpush3.bf16.msra.mxu0 %v4538_v45 }
 0xa5f   :  { %4543 = vmatprep.subr.bf16.mxu0 %v4542_v48 }
 0xa62   :  { %4545 = vmatpush3.bf16.msra.mxu0 %v4542_v48 }
 0xa63   :  { %4547 = vmatprep.subr.bf16.mxu0 %v4546_v51 }
 0xa66   :  { %4549 = vmatpush3.bf16.msra.mxu0 %v4546_v51 }
 0xb2c   :  { %v4269_v60 = vpop.f32.mrb[18].mxu0 }
 0xb2d   :  { %v1904_v61 = vadd.f32 %v4269_v60, %v3809_v8  ;;  %v1898_v62 = vpop.f32.mrb[19].mxu0 }
 0xb2e   :  { %v1899_v63 = vadd.f32 %v3809_v8, %v1898_v62 }
 0xb2f   :  { %v1908_v0 = vadd.f32 %v1904_v61, %v5198_v5 }
 0xb30   :  { %v1907_v7 = vadd.f32 %v1899_v63, %v5194_v3  ;;  %v1955_v3 = vld [vmem:[%s5695_s14] sm:$0xff] }
 0xb31   :  { %v1916_v1 = vsel %vm563_vm2, %v1908_v0, 0.0  ;;  %v4526_v11 = vpack.c.bf16 %v1956_v18, %v1955_v3 }
 0xb32   :  { %1917 = vadd.xlane.f32.xlu1 %v1916_v1  ;;  %v1913_v2 = vsel %vm563_vm2, %v1907_v7, 0.0 }
 0xb33   :  { %1914 = vadd.xlane.f32.xlu0 %v1913_v2  ;;  %4527 = vmatprep.subr.bf16.mxu1 %v4526_v11 }
 0xb34   :  { %4529 = vmatpush3.bf16.msra.mxu1 %v4526_v11 }
 0xb35   :  { %4531 = vmatprep.subr.bf16.mxu1 %v4530_v21 }
 0xb38   :  { %4533 = vmatpush3.bf16.msra.mxu1 %v4530_v21 }
 0xbbf   :  { %v1918_v4 = vpop.xlane.xlu1 %1917 }
 0xbc0   :  { %v1920_v6 = vmul.f32 0.03125, %v1918_v4  ;;  %v1915_v9 = vpop.xlane.xlu0 %1914 }
 0xbc1   :  { %v1919_v10 = vmul.f32 0.03125, %v1915_v9 }
 0xbc2   :  { %v1922_v12 = vsub.f32 %v1908_v0, %v1920_v6 }
 0xbc3   :  { %v1921_v13 = vsub.f32 %v1907_v7, %v1919_v10 }
 0xbc4   :  { %v1924_v17 = vmul.f32 %v1922_v12, %v1922_v12 }
 0xbc5   :  { %v1923_v14 = vmul.f32 %v1921_v13, %v1921_v13 }
 0xbc6   :  { %v1928_v5 = vsel %vm563_vm2, %v1924_v17, 0.0 }
 0xbc7   :  { %v1925_v16 = vsel %vm563_vm2, %v1923_v14, 0.0  ;;  %v3820_v14 = vld [vmem:[%s5694_s13 + $0x3] ss:$0 sm:$0xff] }
 0xbc8   :  { %1926 = vadd.xlane.f32.xlu0 %v1925_v16 }
 0xbcc   :  { %1929 = vadd.xlane.f32.xlu0 %v1928_v5 }
 0xc55   :  { %v1927_v22 = vpop.xlane.xlu0 %1926 }
 0xc56   :  { %v1931_v23 = vmul.f32 0.03125, %v1927_v22 }
 0xc58   :  { %v1933_v24 = vadd.f32 1e-12, %v1931_v23 }
 0xc59   :  { %v1930_v25 = vpop.xlane.xlu0 %1929 }
 0xc5a   :  { %4791 = vrsqrt.f32 %v1933_v24  ;;  %v1932_v26 = vmul.f32 0.03125, %v1930_v25 }
 0xc5c   :  { %v1934_v27 = vadd.f32 1e-12, %v1932_v26 }
 0xc5e   :  { %4793 = vrsqrt.f32 %v1934_v27 }
 0xc64   :  { %v4792_v29 = vpop.eup %4791 }
 0xc65   :  { %v1937_v32 = vmul.f32 %v4792_v29, %v1921_v13 }
 0xc67   :  { %v1945_v34 = vmul.f32 %v3814_v30, %v1937_v32 }
 0xc68   :  { %v4794_v35 = vpop.eup %4793 }
 0xc69   :  { %v1938_v36 = vmul.f32 %v4794_v35, %v1922_v12  ;;  %v1953_v37 = vadd.f32 %v3815_v33, %v1945_v34  ;;  %v3828_v34 = vld [vmem:[%s5691_s10 + $0x28] sm:$0xff] }
 0xc6b   :  { %v1946_v38 = vmul.f32 %v3814_v30, %v1938_v36  ;;  %4278 = vmatprep.mubr.msk.f32.mxu1 %vm563_vm2, %v1953_v37  ;;  %v3829_v36 = vld [vmem:[%s5691_s10 + $0x30] sm:$0xff] }
 0xc6d   :  { %v1954_v39 = vadd.f32 %v3815_v33, %v1946_v38  ;;  %v3827_v33 = vld [vmem:[%s5691_s10 + $0x20] sm:$0xff] }
 0xc6e   :  { %v4550_v35 = vpack.c.bf16 %v3828_v34, %v3827_v33 }
 0xc6f   :  { %4279 = vmatmul.mubr.msk.f32.vlgmr.msra.gmra.mrb[22].mxu1 %vm563_vm2, %v1954_v39 }
 0xc70   :  { %4551 = vmatprep.subr.bf16.mxu1 %v4550_v35 }
 0xc71   :  { %4553 = vmatpush3.bf16.msra.mxu1 %v4550_v35 }
 0xd42   :  { %v4280_v53 = vpop.f32.mrb[22].mxu1 }
 0xd43   :  { %v2044_v54 = vadd.f32 %v4280_v53, %v3816_v52  ;;  %v2038_v55 = vpop.f32.mrb[23].mxu1 }
 0xd44   :  { %v2039_v56 = vadd.f32 %v3816_v52, %v2038_v55  ;;  %v3832_v55 = vld [vmem:[%s5692_s11 + $0x1] ss:$0 sm:$0xff] }
 0xd45   :  { %v2048_v57 = vmul.f32 %v2044_v54, %v2044_v54 }
 0xd46   :  { %v2047_v58 = vmul.f32 %v2039_v56, %v2039_v56 }
 0xd47   :  { %v2050_v59 = vmul.f32 %v2048_v57, %v2044_v54 }
 0xd48   :  { %v2049_v8 = vmul.f32 %v2047_v58, %v2039_v56 }
 0xd49   :  { %v2052_v60 = vmul.f32 0.044715, %v2050_v59 }
 0xd4a   :  { %v2051_v61 = vmul.f32 0.044715, %v2049_v8 }
 0xd4b   :  { %v2054_v62 = vadd.f32 %v2052_v60, %v2044_v54 }
 0xd4c   :  { %v2053_v63 = vadd.f32 %v2051_v61, %v2039_v56 }
 0xd4d   :  { %v2056_v0 = vmul.f32 0.7978846, %v2054_v62 }
 0xd4e   :  { %v2055_v7 = vmul.f32 0.7978846, %v2053_v63 }
 0xd4f   :  { %4795 = vtanh.f32 %v2056_v0 }
 0xd50   :  { %4797 = vtanh.f32 %v2055_v7 }
 0xd59   :  { %v4796_v1 = vpop.eup %4795 }
 0xd5a   :  { %v4798_v2 = vpop.eup %4797  ;;  %v2060_v4 = vadd.f32 1.0, %v4796_v1 }
 0xd5b   :  { %v2059_v6 = vadd.f32 1.0, %v4798_v2 }
 0xd5c   :  { %v2062_v9 = vmul.f32 0.5, %v2060_v4 }
 0xd5d   :  { %v2061_v10 = vmul.f32 0.5, %v2059_v6 }
 0xd5e   :  { %v2064_v13 = vmul.f32 %v2062_v9, %v2044_v54 }
 0xd5f   :  { %v2063_v12 = vmul.f32 %v2061_v10, %v2039_v56 }
 0xd61   :  { %4297 = vmatprep.mubr.msk.f32.mxu0 %vm2081_vm6, %v2063_v12 }
 0xd62   :  { %4298 = vmatmul.mubr.msk.f32.vlgmr.msra.gmra.mrb[20].mxu0 %vm2081_vm6, %v2064_v13 }
 0xe35   :  { %v4299_v16 = vpop.f32.mrb[20].mxu0 }
 0xe36   :  { %v2160_v17 = vadd.f32 %v4299_v16, %v3820_v14  ;;  %v2154_v5 = vpop.f32.mrb[21].mxu0 }
 0xe37   :  { %v2155_v3 = vadd.f32 %v3820_v14, %v2154_v5 }
 0xe38   :  { %v2164_v18 = vadd.f32 %v2160_v17, %v1954_v39 }
 0xe39   :  { %v2163_v11 = vadd.f32 %v2155_v3, %v1953_v37  ;;  %v3830_v37 = vld [vmem:[%s5691_s10 + $0x38] sm:$0xff] }
 0xe3a   :  { %v2172_v19 = vsel %vm563_vm2, %v2164_v18, 0.0  ;;  %v4554_v38 = vpack.c.bf16 %v3830_v37, %v3829_v36 }
 0xe3b   :  { %2173 = vadd.xlane.f32.xlu1 %v2172_v19  ;;  %v2169_v20 = vsel %vm563_vm2, %v2163_v11, 0.0 }
 0xe3c   :  { %2170 = vadd.xlane.f32.xlu0 %v2169_v20  ;;  %4555 = vmatprep.subr.bf16.mxu1 %v4554_v38 }
 0xe3d   :  { %4557 = vmatpush3.bf16.msra.mxu1 %v4554_v38 }
 0xec8   :  { %v2174_v21 = vpop.xlane.xlu1 %2173 }
 0xec9   :  { %v2176_v22 = vmul.f32 0.03125, %v2174_v21  ;;  %v2171_v23 = vpop.xlane.xlu0 %2170 }
 0xeca   :  { %v2175_v24 = vmul.f32 0.03125, %v2171_v23 }
 0xecb   :  { %v2178_v25 = vsub.f32 %v2164_v18, %v2176_v22 }
 0xecc   :  { %v2177_v26 = vsub.f32 %v2163_v11, %v2175_v24 }
 0xecd   :  { %v2180_v27 = vmul.f32 %v2178_v25, %v2178_v25 }
 0xece   :  { %v2179_v29 = vmul.f32 %v2177_v26, %v2177_v26 }
 0xecf   :  { %v2184_v30 = vsel %vm563_vm2, %v2180_v27, 0.0 }
 0xed0   :  { %2185 = vadd.xlane.f32.xlu1 %v2184_v30  ;;  %v2181_v32 = vsel %vm563_vm2, %v2179_v29, 0.0 }
 0xed1   :  { %2182 = vadd.xlane.f32.xlu0 %v2181_v32 }
 0xf5d   :  { %v2186_v39 = vpop.xlane.xlu1 %2185 }
 0xf5e   :  { %v2188_v40 = vmul.f32 0.03125, %v2186_v39  ;;  %v2183_v41 = vpop.xlane.xlu0 %2182 }
 0xf5f   :  { %v2187_v42 = vmul.f32 0.03125, %v2183_v41 }
 0xf60   :  { %v2190_v43 = vadd.f32 1e-12, %v2188_v40 }
 0xf61   :  { %v2189_v44 = vadd.f32 1e-12, %v2187_v42 }
 0xf62   :  { %4799 = vrsqrt.f32 %v2190_v43 }
 0xf63   :  { %4801 = vrsqrt.f32 %v2189_v44 }
 0xf6c   :  { %v4800_v45 = vpop.eup %4799 }
 0xf6d   :  { %v4802_v47 = vpop.eup %4801  ;;  %v2194_v48 = vmul.f32 %v4800_v45, %v2178_v25 }
 0xf6e   :  { %v2193_v49 = vmul.f32 %v4802_v47, %v2177_v26 }
 0xf6f   :  { %v2202_v51 = vmul.f32 %v3825_v46, %v2194_v48 }
 0xf70   :  { %v2201_v52 = vmul.f32 %v3825_v46, %v2193_v49 }
 0xf71   :  { %v5433_v54 = vadd.f32 %v3826_v50, %v2202_v51 }
 0xf72   :  { %v5431_v53 = vadd.f32 %v3826_v50, %v2201_v52 }
 0xf74   :  { %4308 = vmatprep.mubr.msk.f32.mxu1 %vm563_vm2, %v5431_v53 }
 0xf75   :  { %4309 = vmatmul.mubr.msk.f32.vlgmr.msra.gmra.mrb[24].mxu1 %vm563_vm2, %v5433_v54 }
0x1048   :  { %v4310_v56 = vpop.f32.mrb[24].mxu1 }
0x1049   :  { %v5442_v57 = vadd.f32 %v4310_v56, %v3832_v55  ;;  %v2296_v58 = vpop.f32.mrb[25].mxu1 }
0x104a   :  { %v5444_v59 = vadd.f32 %v3832_v55, %v2296_v58 }
0x104c   :  { %4315 = vmatprep.mubr.msk.f32.mxu1 %vm975_vm3, %v5444_v59  ;;  %v5450_v8 = vpack.i.bf16 %v5442_v57, %v5444_v59 }
0x104e   :  { %4721 = vrot.lane.b32.xlu1 %v5450_v8, %s4874_s26  ;;  %4716 = vrot.lane.b32.xlu0 %v5450_v8, %s4873_s9 }
0x1052   :  { %2507 = vrot.lane.b32.xlu1 %v5444_v59, %s4877_s0 }
0x1056   :  { %2509 = vrot.lane.b32.xlu1 %v5442_v57, %s4877_s0 }
0x10c0   :  { %v4722_v60 = vpop.permute.xlu1 %4721  ;;  %v4717_v61 = vpop.permute.xlu0 %4716 }
0x10c1   :  { %v4724_v62 = vunpack.i.h.bf16 %v4722_v60  ;;  %v4723_v63 = vunpack.i.l.bf16 %v4722_v60  ;;  %v4719_v0 = vunpack.i.h.bf16 %v4717_v61  ;;  %v4718_v7 = vunpack.i.l.bf16 %v4717_v61 }
0x10c3   :  { %v4558_v1 = vpack.c.bf16 %v4719_v0, %v4718_v7  ;;  %v4568_v2 = vpack.c.bf16 %v4724_v62, %v4723_v63 }
0x10c4   :  { %v2508_v4 = vpop.permute.xlu1 %2507 }
0x10c5   :  { %4560 = vmatprep.subr.msk.bf16.mxu1 %vm5225_vm4, %v4558_v1 }
0x10c6   :  { %4563 = vmatpush3.bf16.xpose.msk.msra.mxu1 %vm5225_vm4, %v4558_v1 }
0x10c7   :  { %4570 = vmatprep.subr.msk.bf16.mxu1 %vm5225_vm4, %v4568_v2 }
0x10c8   :  { %v2510_v6 = vpop.permute.xlu1 %2509 }
0x10cd   :  { %4316 = vmatmul.mubr.msk.f32.vlgmr.msra.gmra.mrb[26].mxu1 %vm975_vm3, %v5442_v57 }
0x10ce   :  { %4573 = vmatpush3.bf16.xpose.msk.msra.mxu1 %vm5225_vm4, %v4568_v2  ;;  %4329 = vmatprep.mubr.msk.f32.mxu1 %vm975_vm3, %v2508_v4 }
0x10d5   :  { %4330 = vmatmul.mubr.msk.f32.vlgmr.msra.gmra.mrb[28].mxu1 %vm975_vm3, %v2510_v6 }
0x11a0   :  { %v4317_v9 = vpop.f32.mrb[26].mxu1 }
0x11a1   :  { %v2395_v10 = vmul.f32 0.35355338, %v4317_v9  ;;  %v2385_v12 = vpop.f32.mrb[27].mxu1 }
0x11a2   :  { %v2394_v13 = vmul.f32 0.35355338, %v2385_v12 }
0x11a3   :  { %v2397_v14 = vadd.f32 %v2395_v10, %v5248_v31 }
0x11a4   :  { %v2396_v16 = vadd.f32 %v2394_v13, %v5243_v28 }
0x11a5   :  { %v2401_v17 = vsel %vm178_vm0, %v2397_v14, -inf }
0x11a6   :  { %2402 = vmax.xlane.f32.xlu1 %v2401_v17  ;;  %v2398_v5 = vsel %vm178_vm0, %v2396_v16, -inf }
0x11a7   :  { %2399 = vmax.xlane.f32.xlu0 %v2398_v5 }
0x11a8   :  { %v4331_v3 = vpop.f32.mrb[28].mxu1 }
0x11a9   :  { %v2589_v18 = vpop.f32.mrb[29].mxu1  ;;  %v2599_v11 = vmul.f32 0.35355338, %v4331_v3 }
0x11aa   :  { %v2598_v19 = vmul.f32 0.35355338, %v2589_v18 }
0x11ab   :  { %v2601_v22 = vadd.f32 %v2599_v11, %v5248_v31 }
0x11ac   :  { %v2600_v20 = vadd.f32 %v2598_v19, %v5243_v28 }
0x11ad   :  { %v2605_v23 = vsel %vm178_vm0, %v2601_v22, -inf }
0x11ae   :  { %v2602_v21 = vsel %vm178_vm0, %v2600_v20, -inf }
0x11af   :  { %2603 = vmax.xlane.f32.xlu0 %v2602_v21 }
0x11b3   :  { %2606 = vmax.xlane.f32.xlu0 %v2605_v23 }
0x1233   :  { %v2403_v24 = vpop.xlane.xlu1 %2402 }
0x1234   :  { %v2405_v25 = vsub.f32 %v2397_v14, %v2403_v24  ;;  %v2400_v26 = vpop.xlane.xlu0 %2399 }
0x1235   :  { %v2404_v27 = vsub.f32 %v2396_v16, %v2400_v26 }
0x1236   :  { %v2408_v29 = vmul.f32 1.442695, %v2405_v25 }
0x1237   :  { %v2406_v30 = vmul.f32 1.442695, %v2404_v27 }
0x1238   :  { %4803 = vpow2.f32 %v2408_v29 }
0x1239   :  { %4805 = vpow2.f32 %v2406_v30 }
0x123c   :  { %v2604_v32 = vpop.xlane.xlu0 %2603 }
0x123d   :  { %v2608_v33 = vsub.f32 %v2600_v20, %v2604_v32  ;;  %v4847_v20 = vld [vmem:[%s5685_s4 + $0x8] sm:$0xff] }
0x123f   :  { %v2610_v34 = vmul.f32 1.442695, %v2608_v33 }
0x1240   :  { %v2607_v28 = vpop.xlane.xlu0 %2606 }
0x1241   :  { %4807 = vpow2.f32 %v2610_v34  ;;  %v2609_v35 = vsub.f32 %v2601_v22, %v2607_v28  ;;  %v4848_v22 = vld [vmem:[%s5685_s4] sm:$0xff]  ;;  %s5721_s4 = smov 8  }
0x1242   :  { %v4804_v36 = vpop.eup %4803 }
0x1243   :  { %v4806_v31 = vpop.eup %4805  ;;  %v2612_v37 = vmul.f32 1.442695, %v2609_v35  ;;  %v2413_v38 = vsel %vm178_vm0, %v4804_v36, 0.0 }
0x1244   :  { %2414 = vadd.xlane.f32.xlu1 %v2413_v38  ;;  %v2410_v39 = vsel %vm178_vm0, %v4806_v31, 0.0 }
0x1245   :  { %4809 = vpow2.f32 %v2612_v37  ;;  %2411 = vadd.xlane.f32.xlu0 %v2410_v39 }
0x124b   :  { %v4808_v40 = vpop.eup %4807 }
0x124c   :  { %v2614_v41 = vsel %vm178_vm0, %v4808_v40, 0.0 }
0x124d   :  { %2615 = vadd.xlane.f32.xlu0 %v2614_v41 }
0x124f   :  { %v4810_v42 = vpop.eup %4809 }
0x1250   :  { %v2617_v43 = vsel %vm178_vm0, %v4810_v42, 0.0 }
0x1251   :  { %2618 = vadd.xlane.f32.xlu1 %v2617_v43 }
0x1262   :  { %4731 = vrot.lane.b32.xlu1 %v5450_v8, %s4881_s23 }
0x1263   :  { %4726 = vrot.lane.b32.xlu0 %v5450_v8, %s4880_s22 }
0x1266   :  { %4736 = vrot.lane.b32.xlu1 %v5450_v8, %s4875_s27 }
0x1267   :  { %2713 = vrot.lane.b32.xlu0 %v5442_v57, %s4878_s30 }
0x126a   :  { %2711 = vrot.lane.b32.xlu1 %v5444_v59, %s4878_s30 }
0x12d1   :  { %v2415_v45 = vpop.xlane.xlu1 %2414 }
0x12d2   :  { %v2412_v44 = vpop.xlane.xlu0 %2411 }
0x12d3   :  { %4811 = vrcp.f32 %v2412_v44 }
0x12d4   :  { %4813 = vrcp.f32 %v2415_v45 }
0x12da   :  { %v2616_v46 = vpop.xlane.xlu0 %2615 }
0x12db   :  { %4815 = vrcp.f32 %v2616_v46 }
0x12dd   :  { %v4812_v47 = vpop.eup %4811 }
0x12de   :  { %v2619_v48 = vpop.xlane.xlu1 %2618  ;;  %v4727_v49 = vpop.permute.xlu0 %4726  ;;  %v2417_v50 = vmul.f32 %v4812_v47, %v4806_v31 }
0x12df   :  { %4817 = vrcp.f32 %v2619_v48  ;;  %v4729_v51 = vunpack.i.h.bf16 %v4727_v49  ;;  %v4728_v52 = vunpack.i.l.bf16 %v4727_v49  ;;  %v4814_v56 = vpop.eup %4813 }
0x12e0   :  { %4322 = vmatprep.mubr.msk.f32.mxu0 %vm178_vm0, %v2417_v50  ;;  %v2419_v63 = vmul.f32 %v4814_v56, %v4804_v36 }
0x12e1   :  { %v4564_v55 = vpack.c.bf16 %v4729_v51, %v4728_v52 }
0x12e2   :  { %v4732_v58 = vpop.permute.xlu1 %4731  ;;  %v2714_v13 = vpop.permute.xlu0 %2713 }
0x12e3   :  { %v4734_v60 = vunpack.i.h.bf16 %v4732_v58  ;;  %v4733_v61 = vunpack.i.l.bf16 %v4732_v58  ;;  %4565 = vmatprep.subr.bf16.mxu0 %v4564_v55 }
0x12e4   :  { %4567 = vmatpush3.bf16.msra.mxu0 %v4564_v55 }
0x12e5   :  { %v4816_v62 = vpop.eup %4815  ;;  %v4574_v0 = vpack.c.bf16 %v4734_v60, %v4733_v61 }
0x12e6   :  { %v4737_v7 = vpop.permute.xlu1 %4736  ;;  %v2621_v1 = vmul.f32 %v4816_v62, %v4808_v40 }
0x12e7   :  { %v4739_v2 = vunpack.i.h.bf16 %v4737_v7  ;;  %v4738_v4 = vunpack.i.l.bf16 %v4737_v7  ;;  %4323 = vmatmul.mubr.msk.f32.vlgmr.msra.gmra.mrb[22].mxu0 %vm178_vm0, %v2419_v63  ;;  %4575 = vmatprep.subr.bf16.mxu0 %v4574_v0 }
0x12e8   :  { %4577 = vmatpush3.bf16.msra.mxu0 %v4574_v0  ;;  %4336 = vmatprep.mubr.msk.f32.mxu0 %vm178_vm0, %v2621_v1 }
0x12e9   :  { %v4818_v6 = vpop.eup %4817  ;;  %v4578_v9 = vpack.c.bf16 %v4739_v2, %v4738_v4 }
0x12ea   :  { %v2623_v10 = vmul.f32 %v4818_v6, %v4810_v42  ;;  %v2712_v12 = vpop.permute.xlu1 %2711 }
0x12eb   :  { %4580 = vmatprep.subr.msk.bf16.mxu0 %vm5225_vm4, %v4578_v9 }
0x12ec   :  { %4337 = vmatmul.mubr.msk.f32.vlgmr.msra.gmra.mrb[24].mxu0 %vm178_vm0, %v2623_v10 }
0x12ed   :  { %4343 = vmatprep.mubr.msk.f32.mxu0 %vm975_vm3, %v2712_v12 }
0x12f1   :  { %4583 = vmatpush3.bf16.xpose.msk.msra.mxu0 %vm5225_vm4, %v4578_v9 }
0x12f8   :  { %4344 = vmatmul.mubr.msk.f32.vlgmr.msra.gmra.mrb[26].mxu0 %vm975_vm3, %v2714_v13 }
0x13ba   :  { %v5504_v14 = vpop.f32.mrb[22].mxu0 }
0x13bb   :  { %v5506_v16 = vpop.f32.mrb[23].mxu0 }
0x13bf   :  { %v5508_v17 = vpop.f32.mrb[24].mxu0 }
0x13c0   :  { %v5510_v5 = vpop.f32.mrb[25].mxu0 }
0x13cb   :  { %v4345_v3 = vpop.f32.mrb[26].mxu0 }
0x13cc   :  { %v2803_v18 = vmul.f32 0.35355338, %v4345_v3  ;;  %v2793_v11 = vpop.f32.mrb[27].mxu0 }
0x13cd   :  { %v2802_v19 = vmul.f32 0.35355338, %v2793_v11 }
0x13ce   :  { %v2805_v21 = vadd.f32 %v4847_v20, %v2803_v18 }
0x13cf   :  { %v2804_v23 = vadd.f32 %v4848_v22, %v2802_v19 }
0x13d0   :  { %v2809_v24 = vsel %vm178_vm0, %v2805_v21, -inf }
0x13d1   :  { %2810 = vmax.xlane.f32.xlu0 %v2809_v24  ;;  %v2806_v25 = vsel %vm178_vm0, %v2804_v23, -inf  ;;  %v3861_v24 = vld [vmem:[%s5693_s12 + $0x30] sm:$0xff] }
0x13d2   :  { %2807 = vmax.xlane.f32.xlu1 %v2806_v25 }
0x13e3   :  { %4741 = vrot.lane.b32.xlu1 %v5450_v8, %s4882_s6 }
0x13e7   :  { %2915 = vrot.lane.b32.xlu1 %v5444_v59, %s4879_s7 }
0x13eb   :  { %2917 = vrot.lane.b32.xlu1 %v5442_v57, %s4879_s7 }
0x145e   :  { %v2811_v26 = vpop.xlane.xlu0 %2810 }
0x145f   :  { %v2813_v27 = vsub.f32 %v2805_v21, %v2811_v26  ;;  %v2808_v29 = vpop.xlane.xlu1 %2807  ;;  %v3862_v26 = vld [vmem:[%s5693_s12 + $0x38] sm:$0xff] }
0x1460   :  { %v2812_v30 = vsub.f32 %v2804_v23, %v2808_v29  ;;  %v3859_v23 = vld [vmem:[%s5693_s12 + $0x20] sm:$0xff] }
0x1461   :  { %v2816_v32 = vmul.f32 1.442695, %v2813_v27  ;;  %v4602_v27 = vpack.c.bf16 %v3862_v26, %v3861_v24  ;;  %v3884_v26 = vld [vmem:[%s5697_s16 + $0x68] sm:$0xff] }
0x1462   :  { %v2814_v33 = vmul.f32 1.442695, %v2812_v30 }
0x1463   :  { %4819 = vpow2.f32 %v2816_v32  ;;  %v4742_v34 = vpop.permute.xlu1 %4741 }
0x1464   :  { %v4744_v28 = vunpack.i.h.bf16 %v4742_v34  ;;  %v4743_v35 = vunpack.i.l.bf16 %v4742_v34  ;;  %4821 = vpow2.f32 %v2814_v33 }
0x1466   :  { %v4584_v36 = vpack.c.bf16 %v4744_v28, %v4743_v35 }
0x1467   :  { %v2916_v48 = vpop.permute.xlu1 %2915 }
0x1468   :  { %4585 = vmatprep.subr.bf16.mxu1 %v4584_v36 }
0x1469   :  { %4587 = vmatpush3.bf16.msra.mxu1 %v4584_v36 }
0x146b   :  { %v2918_v49 = vpop.permute.xlu1 %2917 }
0x146d   :  { %v4820_v31 = vpop.eup %4819 }
0x146e   :  { %v2821_v59 = vsel %vm178_vm0, %v4820_v31, 0.0  ;;  %v4822_v37 = vpop.eup %4821 }
0x146f   :  { %2822 = vadd.xlane.f32.xlu0 %v2821_v59  ;;  %v2818_v57 = vsel %vm178_vm0, %v4822_v37, 0.0 }
0x1473   :  { %2819 = vadd.xlane.f32.xlu0 %v2818_v57 }
0x1489   :  { %4746 = vrot.lane.b32.xlu0 %v5450_v8, %s4876_s28  ;;  %s5722_s28 = smov 16  }
0x14fc   :  { %v2823_v38 = vpop.xlane.xlu0 %2822 }
0x14fd   :  { %4823 = vrcp.f32 %v2823_v38 }
0x1500   :  { %v2820_v39 = vpop.xlane.xlu0 %2819 }
0x1501   :  { %4825 = vrcp.f32 %v2820_v39 }
0x1504   :  { %v4747_v40 = vpop.permute.xlu0 %4746 }
0x1505   :  { %v4749_v41 = vunpack.i.h.bf16 %v4747_v40  ;;  %v4748_v42 = vunpack.i.l.bf16 %v4747_v40 }
0x1507   :  { %v4588_v43 = vpack.c.bf16 %v4749_v41, %v4748_v42  ;;  %v4824_v44 = vpop.eup %4823 }
0x1508   :  { %v2827_v47 = vmul.f32 %v4824_v44, %v4820_v31 }
0x1509   :  { %4590 = vmatprep.subr.msk.bf16.mxu1 %vm5225_vm4, %v4588_v43 }
0x150b   :  { %v4826_v45 = vpop.eup %4825 }
0x150c   :  { %v2825_v46 = vmul.f32 %v4826_v45, %v4822_v37 }
0x150e   :  { %4350 = vmatprep.mubr.msk.f32.mxu1 %vm178_vm0, %v2825_v46 }
0x150f   :  { %4351 = vmatmul.mubr.msk.f32.vlgmr.msra.gmra.mrb[30].mxu1 %vm178_vm0, %v2827_v47 }
0x1510   :  { %4593 = vmatpush3.bf16.xpose.msk.msra.mxu1 %vm5225_vm4, %v4588_v43  ;;  %4357 = vmatprep.mubr.msk.f32.mxu1 %vm975_vm3, %v2916_v48 }
0x1517   :  { %4358 = vmatmul.mubr.msk.f32.vlgmr.msra.gmra.mrb[32].mxu1 %vm975_vm3, %v2918_v49 }
0x15e2   :  { %v4352_v50 = vpop.f32.mrb[30].mxu1 }
0x15e3   :  { %v2906_v51 = vpop.f32.mrb[31].mxu1 }
0x15ea   :  { %v4359_v52 = vpop.f32.mrb[32].mxu1 }
0x15eb   :  { %v3007_v55 = vmul.f32 0.35355338, %v4359_v52  ;;  %v2997_v56 = vpop.f32.mrb[33].mxu1 }
0x15ec   :  { %v3006_v58 = vmul.f32 0.35355338, %v2997_v56 }
0x15ed   :  { %v3009_v60 = vadd.f32 %v4847_v20, %v3007_v55 }
0x15ee   :  { %v3008_v61 = vadd.f32 %v4848_v22, %v3006_v58 }
0x15ef   :  { %v3013_v62 = vsel %vm178_vm0, %v3009_v60, -inf }
0x15f0   :  { %3014 = vmax.xlane.f32.xlu0 %v3013_v62  ;;  %v3010_v63 = vsel %vm178_vm0, %v3008_v61, -inf  ;;  %v3873_v62 = vld [vmem:[%s5695_s14 + $0x30] sm:$0xff] }
0x15f1   :  { %3011 = vmax.xlane.f32.xlu1 %v3010_v63  ;;  %v3874_v63 = vld [vmem:[%s5695_s14 + $0x38] sm:$0xff] }
0x1602   :  { %4751 = vrot.lane.b32.xlu1 %v5450_v8, %s4883_s8 }
0x1606   :  { %3123 = vrot.lane.b32.xlu1 %v5508_v17, %s5721_s4 }
0x160a   :  { %3129 = vrot.lane.b32.xlu1 %v2906_v51, %s5722_s28 }
0x160e   :  { %3131 = vrot.lane.b32.xlu1 %v4352_v50, %s5722_s28 }
0x167d   :  { %v3015_v15 = vpop.xlane.xlu0 %3014 }
0x167e   :  { %v3017_v0 = vsub.f32 %v3009_v60, %v3015_v15  ;;  %v3012_v7 = vpop.xlane.xlu1 %3011  ;;  %v3872_v60 = vld [vmem:[%s5695_s14 + $0x28] sm:$0xff]  ;;  %v4610_v15 = vpack.c.bf16 %v3874_v63, %v3873_v62 }
0x167f   :  { %v3016_v1 = vsub.f32 %v3008_v61, %v3012_v7 }
0x1680   :  { %v3020_v2 = vmul.f32 1.442695, %v3017_v0 }
0x1681   :  { %v3018_v4 = vmul.f32 1.442695, %v3016_v1 }
0x1682   :  { %v4752_v6 = vpop.permute.xlu1 %4751 }
0x1683   :  { %4827 = vpow2.f32 %v3018_v4  ;;  %v4754_v9 = vunpack.i.h.bf16 %v4752_v6  ;;  %v4753_v10 = vunpack.i.l.bf16 %v4752_v6 }
0x1684   :  { %4829 = vpow2.f32 %v3020_v2 }
0x1685   :  { %v4594_v12 = vpack.c.bf16 %v4754_v9, %v4753_v10  ;;  %v3869_v10 = vld [vmem:[%s5694_s13 + $0x7] ss:$0 sm:$0xff] }
0x1686   :  { %v3124_v32 = vpop.permute.xlu1 %3123 }
0x1687   :  { %4595 = vmatprep.subr.bf16.mxu0 %v4594_v12  ;;  %v3144_v31 = vsel %vm975_vm3, %v5504_v14, %v3124_v32 }
0x1688   :  { %4597 = vmatpush3.bf16.msra.mxu0 %v4594_v12 }
0x168a   :  { %v3130_v33 = vpop.permute.xlu1 %3129 }
0x168d   :  { %v4828_v8 = vpop.eup %4827 }
0x168e   :  { %v3022_v13 = vsel %vm178_vm0, %v4828_v8, 0.0  ;;  %v4830_v17 = vpop.eup %4829  ;;  %v3132_v28 = vpop.permute.xlu1 %3131 }
0x168f   :  { %3023 = vadd.xlane.f32.xlu0 %v3022_v13  ;;  %v3025_v3 = vsel %vm178_vm0, %v4830_v17, 0.0  ;;  %v3146_v57 = vsel %vm178_vm0, %v3144_v31, %v3132_v28 }
0x1693   :  { %3026 = vadd.xlane.f32.xlu0 %v3025_v3 }
0x16a9   :  { %3121 = vrot.lane.b32.xlu0 %v5510_v5, %s5721_s4  ;;  %v3860_v5 = vld [vmem:[%s5693_s12 + $0x28] sm:$0xff] }
0x16aa   :  { %v4598_v25 = vpack.c.bf16 %v3860_v5, %v3859_v23  ;;  %v3881_v23 = vld [vmem:[%s5697_s16 + $0x50] sm:$0xff]  ;;  %v3882_v5 = vld [vmem:[%s5697_s16 + $0x58] sm:$0xff] }
0x16ab   :  { %v4618_v24 = vpack.c.bf16 %v3882_v5, %v3881_v23  ;;  %v3894_v23 = vld [vmem:[%s5694_s13 + $0xb] ss:$0 sm:$0xff] }
0x16ac   :  { %4599 = vmatprep.subr.bf16.mxu0 %v4598_v25 }
0x171c   :  { %v3024_v18 = vpop.xlane.xlu0 %3023 }
0x171d   :  { %4831 = vrcp.f32 %v3024_v18 }
0x1720   :  { %v3027_v11 = vpop.xlane.xlu0 %3026 }
0x1721   :  { %4833 = vrcp.f32 %v3027_v11 }
0x1724   :  { %v3122_v34 = vpop.permute.xlu0 %3121 }
0x1725   :  { %v3143_v35 = vsel %vm975_vm3, %v5506_v16, %v3122_v34  ;;  %v3864_v16 = vld [vmem:[%s5694_s13 + $0x6] ss:$0 sm:$0xff] }
0x1726   :  { %v3145_v59 = vsel %vm178_vm0, %v3143_v35, %v3130_v33  ;;  %v3876_v33 = vld [vmem:[%s5696_s15 + $0x1] ss:$0 sm:$0xff] }
0x1727   :  { %v4832_v19 = vpop.eup %4831 }
0x1728   :  { %v3029_v20 = vmul.f32 %v4832_v19, %v4828_v8  ;;  %v3870_v8 = vld [vmem:[%s5694_s13 + $0x8] ss:$0 sm:$0xff] }
0x172a   :  { %4364 = vmatprep.mubr.msk.f32.mxu0 %vm178_vm0, %v3029_v20  ;;  %v3879_v20 = vld [vmem:[%s5697_s16 + $0x40] sm:$0xff] }
0x172b   :  { %v4834_v21 = vpop.eup %4833 }
0x172c   :  { %v3031_v22 = vmul.f32 %v4834_v21, %v4830_v17  ;;  %v3880_v21 = vld [vmem:[%s5697_s16 + $0x48] sm:$0xff] }
0x172e   :  { %4365 = vmatmul.mubr.msk.f32.vlgmr.msra.gmra.mrb[28].mxu0 %vm178_vm0, %v3031_v22  ;;  %v4614_v22 = vpack.c.bf16 %v3880_v21, %v3879_v20 }
0x172f   :  { %4601 = vmatpush3.bf16.msra.mxu0 %v4598_v25  ;;  %v3883_v25 = vld [vmem:[%s5697_s16 + $0x60] sm:$0xff] }
0x1730   :  { %4603 = vmatprep.subr.bf16.mxu0 %v4602_v27 }
0x1733   :  { %4605 = vmatpush3.bf16.msra.mxu0 %v4602_v27  ;;  %v4622_v27 = vpack.c.bf16 %v3884_v26, %v3883_v25 }
0x1734   :  { %4615 = vmatprep.subr.bf16.mxu0 %v4614_v22 }
0x1801   :  { %v4366_v29 = vpop.f32.mrb[28].mxu0 }
0x1802   :  { %3139 = vrot.lane.b32.xlu1 %v4366_v29, %s5723_s2  ;;  %v3110_v30 = vpop.f32.mrb[29].mxu0  ;;  %v3885_v29 = vld [vmem:[%s5697_s16 + $0x70] sm:$0xff] }
0x1803   :  { %3137 = vrot.lane.b32.xlu0 %v3110_v30, %s5723_s2  ;;  %v3886_v30 = vld [vmem:[%s5697_s16 + $0x78] sm:$0xff]  ;;  %s3715_s2 = sshll.u32 %s4890_s1, 4  ;;  %s3716_s2 = int_to_ptr.vmem [resolvable:$true] %s3715_s2 }
0x1804   :  { %v4626_v32 = vpack.c.bf16 %v3886_v30, %v3885_v29  ;;  %v3624_v29 = vld [vmem:[%s5698_s17 + $0x8] sm:$0xff]  ;;  %p4854_p1 = scmp.lt.s32.totalorder %s3716_s2, %s3716_s2 }
0x1874   :  { %v3140_v36 = vpop.permute.xlu1 %3139 }
0x1875   :  { %v3138_v37 = vpop.permute.xlu0 %3137  ;;  %v3148_v39 = vsel %vm1812_vm5, %v3146_v57, %v3140_v36 }
0x1876   :  { %v3147_v38 = vsel %vm1812_vm5, %v3145_v59, %v3138_v37 }
0x1877   :  { %4375 = vmatprep.mubr.msk.f32.mxu0 %vm563_vm2, %v3147_v38 }
0x1878   :  { %4376 = vmatmul.mubr.msk.f32.vlgmr.msra.gmra.mrb[30].mxu0 %vm563_vm2, %v3148_v39 }
0x1879   :  { %4617 = vmatpush3.bf16.msra.mxu0 %v4614_v22 }
0x187a   :  { %4619 = vmatprep.subr.bf16.mxu0 %v4618_v24 }
0x187d   :  { %4621 = vmatpush3.bf16.msra.mxu0 %v4618_v24 }
0x187e   :  { %4623 = vmatprep.subr.bf16.mxu0 %v4622_v27 }
0x1881   :  { %4625 = vmatpush3.bf16.msra.mxu0 %v4622_v27  ;;  %v3623_v27 = vld [vmem:[%s5698_s17] sm:$0xff] }
0x1882   :  { %4627 = vmatprep.subr.bf16.mxu0 %v4626_v32 }
0x1885   :  { %4629 = vmatpush3.bf16.msra.mxu0 %v4626_v32  ;;  %v3549_v32 = vld [vmem:[%s5686_s5] sm:$0x3] }
0x194b   :  { %v4377_v40 = vpop.f32.mrb[30].mxu0 }
0x194c   :  { %v3240_v41 = vadd.f32 %v4377_v40, %v3864_v16  ;;  %v3234_v14 = vpop.f32.mrb[31].mxu0 }
0x194d   :  { %v3235_v42 = vadd.f32 %v3864_v16, %v3234_v14 }
0x194e   :  { %v3244_v43 = vadd.f32 %v3240_v41, %v5433_v54 }
0x194f   :  { %v3243_v44 = vadd.f32 %v3235_v42, %v5431_v53  ;;  %v3871_v53 = vld [vmem:[%s5695_s14 + $0x20] sm:$0xff] }
0x1950   :  { %v3252_v45 = vsel %vm563_vm2, %v3244_v43, 0.0  ;;  %v4606_v61 = vpack.c.bf16 %v3872_v60, %v3871_v53 }
0x1951   :  { %3253 = vadd.xlane.f32.xlu1 %v3252_v45  ;;  %v3249_v46 = vsel %vm563_vm2, %v3243_v44, 0.0 }
0x1952   :  { %3250 = vadd.xlane.f32.xlu0 %v3249_v46  ;;  %4607 = vmatprep.subr.bf16.mxu1 %v4606_v61 }
0x1953   :  { %4609 = vmatpush3.bf16.msra.mxu1 %v4606_v61 }
0x1954   :  { %4611 = vmatprep.subr.bf16.mxu1 %v4610_v15 }
0x1957   :  { %4613 = vmatpush3.bf16.msra.mxu1 %v4610_v15 }
0x19de   :  { %v3254_v47 = vpop.xlane.xlu1 %3253 }
0x19df   :  { %v3256_v48 = vmul.f32 0.03125, %v3254_v47  ;;  %v3251_v49 = vpop.xlane.xlu0 %3250 }
0x19e0   :  { %v3255_v50 = vmul.f32 0.03125, %v3251_v49 }
0x19e1   :  { %v3258_v51 = vsub.f32 %v3244_v43, %v3256_v48 }
0x19e2   :  { %v3257_v52 = vsub.f32 %v3243_v44, %v3255_v50  ;;  %v3888_v50 = vld [vmem:[%s5694_s13 + $0x9] ss:$0 sm:$0xff] }
0x19e3   :  { %v3260_v58 = vmul.f32 %v3258_v51, %v3258_v51 }
0x19e4   :  { %v3259_v55 = vmul.f32 %v3257_v52, %v3257_v52 }
0x19e5   :  { %v3264_v54 = vsel %vm563_vm2, %v3260_v58, 0.0 }
0x19e6   :  { %v3261_v56 = vsel %vm563_vm2, %v3259_v55, 0.0 }
0x19e7   :  { %3262 = vadd.xlane.f32.xlu0 %v3261_v56 }
0x19eb   :  { %3265 = vadd.xlane.f32.xlu0 %v3264_v54 }
0x1a74   :  { %v3263_v0 = vpop.xlane.xlu0 %3262 }
0x1a75   :  { %v3267_v7 = vmul.f32 0.03125, %v3263_v0 }
0x1a77   :  { %v3269_v1 = vadd.f32 1e-12, %v3267_v7 }
0x1a78   :  { %v3266_v2 = vpop.xlane.xlu0 %3265 }
0x1a79   :  { %4835 = vrsqrt.f32 %v3269_v1  ;;  %v3268_v4 = vmul.f32 0.03125, %v3266_v2 }
0x1a7b   :  { %v3270_v6 = vadd.f32 1e-12, %v3268_v4 }
0x1a7d   :  { %4837 = vrsqrt.f32 %v3270_v6 }
0x1a83   :  { %v4836_v9 = vpop.eup %4835 }
0x1a84   :  { %v3273_v12 = vmul.f32 %v4836_v9, %v3257_v52  ;;  %v4887_v9 = vmov 0.0|0.0  }
0x1a85   :  { %4630 = vmatprep.subr.bf16.mxu1 %v4887_v9 }
0x1a86   :  { %v3281_v13 = vmul.f32 %v3869_v10, %v3273_v12 }
0x1a87   :  { %v4838_v17 = vpop.eup %4837 }
0x1a88   :  { %v3274_v3 = vmul.f32 %v4838_v17, %v3258_v51  ;;  %v3289_v18 = vadd.f32 %v3870_v8, %v3281_v13 }
0x1a8a   :  { %v3282_v11 = vmul.f32 %v3869_v10, %v3274_v3  ;;  %4386 = vmatprep.mubr.msk.f32.mxu1 %vm563_vm2, %v3289_v18  ;;  %v4889_v10 = vmov 0.0  }
0x1a8c   :  { %v3290_v19 = vadd.f32 %v3870_v8, %v3282_v11 }
0x1a8e   :  { %4387 = vmatmul.mubr.msk.f32.vlgmr.msra.gmra.mrb[34].mxu1 %vm563_vm2, %v3290_v19 }
0x1a8f   :  { %4412 = vmatprep.mubr.msk.f32.mxu1 %vm4888_vm7, %v4889_v10 }
0x1b61   :  { %v4388_v34 = vpop.f32.mrb[34].mxu1 }
0x1b62   :  { %v3382_v28 = vadd.f32 %v4388_v34, %v3876_v33  ;;  %v3376_v35 = vpop.f32.mrb[35].mxu1  ;;  %v3625_v34 = vld [vmem:[%s5698_s17 + $0x10] sm:$0xff] }
0x1b63   :  { %v3377_v36 = vadd.f32 %v3876_v33, %v3376_v35  ;;  %v4634_v33 = vpack.c.bf16 %v3624_v29, %v3623_v27 }
0x1b64   :  { %v3386_v31 = vmul.f32 %v3382_v28, %v3382_v28 }
0x1b65   :  { %v3385_v59 = vmul.f32 %v3377_v36, %v3377_v36 }
0x1b66   :  { %v3388_v37 = vmul.f32 %v3386_v31, %v3382_v28 }
0x1b67   :  { %v3387_v57 = vmul.f32 %v3385_v59, %v3377_v36  ;;  %v3896_v59 = vld [vmem:[%s5699_s18] ss:$0 sm:$0xff] }
0x1b68   :  { %v3390_v38 = vmul.f32 0.044715, %v3388_v37 }
0x1b69   :  { %v3389_v39 = vmul.f32 0.044715, %v3387_v57 }
0x1b6a   :  { %v3392_v16 = vadd.f32 %v3390_v38, %v3382_v28 }
0x1b6b   :  { %v3391_v40 = vadd.f32 %v3389_v39, %v3377_v36 }
0x1b6c   :  { %v3394_v41 = vmul.f32 0.7978846, %v3392_v16 }
0x1b6d   :  { %v3393_v14 = vmul.f32 0.7978846, %v3391_v40 }
0x1b6e   :  { %4839 = vtanh.f32 %v3394_v41 }
0x1b6f   :  { %4841 = vtanh.f32 %v3393_v14 }
0x1b78   :  { %v4840_v42 = vpop.eup %4839 }
0x1b79   :  { %v4842_v43 = vpop.eup %4841  ;;  %v3398_v44 = vadd.f32 1.0, %v4840_v42 }
0x1b7a   :  { %v3397_v45 = vadd.f32 1.0, %v4842_v43 }
0x1b7b   :  { %v3400_v46 = vmul.f32 0.5, %v3398_v44 }
0x1b7c   :  { %v3399_v47 = vmul.f32 0.5, %v3397_v45 }
0x1b7d   :  { %v3402_v49 = vmul.f32 %v3400_v46, %v3382_v28  ;;  %v3626_v28 = vld [vmem:[%s5698_s17 + $0x18] sm:$0xff]  ;;  %s4849_s17 = scalar_lea.vmem %s3716_s2, 32 }
0x1b7e   :  { %v3401_v48 = vmul.f32 %v3399_v47, %v3377_v36  ;;  %v4637_v35 = vpack.c.bf16 %v3626_v28, %v3625_v34  ;;  %p4850_p0 = scmp.ne.s32.totalorder %s3716_s2, %s4849_s17  ;;  %p4855_p2 = scmp.lt.s32.totalorder %s4849_s17, %s4849_s17 }
0x1b80   :  { %4405 = vmatprep.mubr.msk.f32.mxu0 %vm2081_vm6, %v3401_v48  ;;  %p4856_p3 = por %p4855_p2, %p4854_p1 }
0x1b81   :  { %4406 = vmatmul.mubr.msk.f32.vlgmr.msra.gmra.mrb[32].mxu0 %vm2081_vm6, %v3402_v49 }
0x1b82   :  { %p4857_p4 = pnand %p4856_p3, %p4850_p0 }
0x1c54   :  { %v4407_v51 = vpop.f32.mrb[32].mxu0 }
0x1c55   :  { %v3498_v52 = vadd.f32 %v4407_v51, %v3888_v50  ;;  %v3492_v55 = vpop.f32.mrb[33].mxu0 }
0x1c56   :  { %v3493_v56 = vadd.f32 %v3888_v50, %v3492_v55 }
0x1c57   :  { %v3502_v58 = vadd.f32 %v3498_v52, %v3290_v19  ;;  %v3893_v19 = vld [vmem:[%s5694_s13 + $0xa] ss:$0 sm:$0xff] }
0x1c58   :  { %v3501_v54 = vadd.f32 %v3493_v56, %v3289_v18 }
0x1c59   :  { %v3510_v53 = vsel %vm563_vm2, %v3502_v58, 0.0 }
0x1c5a   :  { %3511 = vadd.xlane.f32.xlu1 %v3510_v53  ;;  %v3507_v60 = vsel %vm563_vm2, %v3501_v54, 0.0 }
0x1c5b   :  { %3508 = vadd.xlane.f32.xlu0 %v3507_v60 }
0x1ce7   :  { %v3512_v61 = vpop.xlane.xlu1 %3511 }
0x1ce8   :  { %v3514_v62 = vmul.f32 0.03125, %v3512_v61  ;;  %v3509_v63 = vpop.xlane.xlu0 %3508 }
0x1ce9   :  { %v3513_v15 = vmul.f32 0.03125, %v3509_v63 }
0x1cea   :  { %v3516_v0 = vsub.f32 %v3502_v58, %v3514_v62 }
0x1ceb   :  { %v3515_v7 = vsub.f32 %v3501_v54, %v3513_v15 }
0x1cec   :  { %v3518_v1 = vmul.f32 %v3516_v0, %v3516_v0 }
0x1ced   :  { %v3517_v2 = vmul.f32 %v3515_v7, %v3515_v7 }
0x1cee   :  { %v3522_v4 = vsel %vm563_vm2, %v3518_v1, 0.0 }
0x1cef   :  { %3523 = vadd.xlane.f32.xlu1 %v3522_v4  ;;  %v3519_v6 = vsel %vm563_vm2, %v3517_v2, 0.0 }
0x1cf0   :  { %3520 = vadd.xlane.f32.xlu0 %v3519_v6 }
0x1d7c   :  { %v3524_v12 = vpop.xlane.xlu1 %3523 }
0x1d7d   :  { %v3526_v8 = vmul.f32 0.03125, %v3524_v12  ;;  %v3521_v13 = vpop.xlane.xlu0 %3520 }
0x1d7e   :  { %v3525_v17 = vmul.f32 0.03125, %v3521_v13 }
0x1d7f   :  { %v3528_v3 = vadd.f32 1e-12, %v3526_v8 }
0x1d80   :  { %v3527_v18 = vadd.f32 1e-12, %v3525_v17 }
0x1d81   :  { %4843 = vrsqrt.f32 %v3528_v3 }
0x1d82   :  { %4845 = vrsqrt.f32 %v3527_v18 }
0x1d8b   :  { %v4844_v11 = vpop.eup %4843 }
0x1d8c   :  { %v4846_v20 = vpop.eup %4845  ;;  %v3532_v21 = vmul.f32 %v4844_v11, %v3516_v0 }
0x1d8d   :  { %v3531_v22 = vmul.f32 %v4846_v20, %v3515_v7 }
0x1d8e   :  { %v3540_v5 = vmul.f32 %v3893_v19, %v3532_v21 }
0x1d8f   :  { %v3539_v24 = vmul.f32 %v3893_v19, %v3531_v22 }
0x1d90   :  { %v3548_v25 = vadd.f32 %v3894_v23, %v3540_v5 }
0x1d91   :  { %v3547_v26 = vadd.f32 %v3894_v23, %v3539_v24 }
0x1d93   :  { %v4631_v30 = vpack.c.bf16 %v3548_v25, %v3547_v26 }
0x1d95   :  { %4632 = vmatpush3.bf16.msra.mxu1 %v4631_v30 }
0x1d96   :  { %4633 = vmatprep.subr.bf16.mxu1 %v4887_v9 }
0x1d98   :  { %4413 = vmatmul.mubr.msk.f32.vlgmr.msra.gmra.mrb[36].mxu1 %vm178_vm0, %v3549_v32 }
0x1d99   :  { %4635 = vmatpush3.bf16.msra.mxu1 %v4634_v33  ;;  %4423 = vmatprep.mubr.msk.f32.mxu1 %vm4888_vm7, %v4889_v10 }
0x1d9a   :  { %4636 = vmatprep.subr.bf16.mxu1 %v4887_v9 }
0x1d9d   :  { %4638 = vmatpush3.bf16.msra.mxu1 %v4637_v35 }
0x1e6b   :  { %v3619_v36 = vpop.f32.mrb[36].mxu1 }
0x1e6c   :  { %v4414_v31 = vpop.f32.mrb[37].mxu1  ;;  %4424 = vmatmul.mubr.msk.f32.vlgmr.msra.gmra.mrb[38].mxu1 %vm563_vm2, %v3619_v36 }
0x1f3f   :  { %v3703_v37 = vpop.f32.mrb[38].mxu1 }
0x1f40   :  { %v3704_v57 = vadd.f32 %v3896_v59, %v3703_v37  ;;  %v4425_v38 = vpop.f32.mrb[39].mxu1 }
0x1f42   :  { %3708 = vst.msk [vmem:[#allocation2] sm:$0x3] %vm3707_vm8, %v3704_v57 }
0x1f43   :  { %4860 = shalt.err (!%p4857_p4)
}
0x1f44   :  { %s4861_s21 = scalar_lea.hbm %s5700_s19, 32 }
0x1f45   :  { %p4862_p5 = scmp.ne.s32.totalorder %s5700_s19, %s4861_s21  ;;  %p4865_p6 = scmp.lt.u32.totalorder %s4861_s21, %s5700_s19 }
0x1f47   :  { %p4867_p7 = pnand %p4865_p6, %p4862_p5 }
0x1f49   :  { %4870 = shalt.err (!%p4867_p7)
}
0x1f4a   :  { %3718 = dma.vmem_to_hbm [thread:$0]  %s3716_s2, 32, %s5700_s19, [#allocation3]  }
0x1f4b   :  { %4871 = dma.done.wait [#allocation3], 32  }
0x1f4c   :  { %4872 = vsyncadd [#allocation3], 4294967264 }
0x1f4d   :  { %3722 = vsyncpa [#allocation3], 1 }

</bundles_post_ra>
